<compile_context>
chip_gen: v5e
topology: v5e:2x2
jax: 0.10.0
libtpu: 0.0.40
codegen_flags: <defaults>
</compile_context>

<pallas_src>
import jax
import jax.numpy as jnp
from jax.experimental import pallas as pl
from jax.experimental.pallas import tpu as pltpu


# ----------------------------- fused kernel -----------------------------

def _make_tcn_kernel(*, T, Cin, C1, D, K1, K2, cstride, p1, p2,
                     L1, Lp1, L2, Lp2, H, P):
    """Builds the fully fused TCN forward kernel. One grid step == one batch row."""

    f32 = jnp.float32

    def _tap(ref, k, l_out, st):
        # Conv tap: rows k, k+st, ..., k+st*(l_out-1) of the padded activation.
        if st == 1:
            return ref[k:k + l_out, :]
        return ref[pl.ds(k, l_out, stride=st), :]

    def kernel(x_ref, w1_ref, bn1s_ref, bn1b_ref,
               w2_ref, bn2s_ref, bn2b_ref,
               wih_ref, whh_ref,
               wp1_ref, p1s_ref, p1b_ref, wp2_ref, bp2_ref,
               o_ref,
               xp1_ref, s1_ref, xp2_ref, s2_ref):

        # ---- conv_block1: Conv1d(Cin->C1, K1, stride, pad=p1, bias=False) + BN + ReLU
        xp1_ref[...] = jnp.zeros_like(xp1_ref)
        xp1_ref[p1:p1 + T, :] = x_ref[0]                      # (T, Cin) into padded scratch
        acc1 = jnp.zeros((L1, C1), f32)
        for k in range(K1):                                   # K accumulated taps, no im2col
            acc1 = acc1 + jnp.dot(_tap(xp1_ref, k, L1, cstride), w1_ref[k],
                                  preferred_element_type=f32)
        y1 = jnp.maximum(acc1 * bn1s_ref[...] + bn1b_ref[...], 0.0)

        # fused MaxPool1d(2, 2, padding=1): out[j] = max(pad_y[2j], pad_y[2j+1]); y >= 0
        s1_ref[...] = jnp.zeros_like(s1_ref)
        s1_ref[1:1 + L1, :] = y1
        pooled1 = jnp.maximum(s1_ref[pl.ds(0, Lp1, stride=2), :],
                              s1_ref[pl.ds(1, Lp1, stride=2), :])        # (Lp1, C1)

        # ---- conv_block2: Conv1d(C1->D, K2, 1, pad=p2, bias=False) + BN + ReLU
        xp2_ref[...] = jnp.zeros_like(xp2_ref)
        xp2_ref[p2:p2 + Lp1, :] = pooled1
        acc2 = jnp.zeros((L2, D), f32)
        for k in range(K2):
            acc2 = acc2 + jnp.dot(_tap(xp2_ref, k, L2, 1), w2_ref[k],
                                  preferred_element_type=f32)
        y2 = jnp.maximum(acc2 * bn2s_ref[...] + bn2b_ref[...], 0.0)

        # fused MaxPool1d(2, 2, padding=1)
        s2_ref[...] = jnp.zeros_like(s2_ref)
        s2_ref[1:1 + L2, :] = y2
        hidden = jnp.maximum(s2_ref[pl.ds(0, Lp2, stride=2), :],
                             s2_ref[pl.ds(1, Lp2, stride=2), :])         # (Lp2, D)

        # ---- encoder LSTM (bias=False, h0=c0=0, gates i,f,g,o; per-gate weight blocks)
        wih = [wih_ref[g] for g in range(4)]
        whh = [whh_ref[g] for g in range(4)]
        # input projection hoisted out of the recurrence: one whole-sequence matmul per gate
        gx = [jnp.dot(hidden, wih[g], preferred_element_type=f32) for g in range(4)]

        h = jnp.zeros((1, D), f32)
        c = jnp.zeros((1, D), f32)
        hs = []
        for t in range(Lp2):                                  # fully unrolled (static length)
            i_t = jax.nn.sigmoid(gx[0][t:t + 1, :] + jnp.dot(h, whh[0], preferred_element_type=f32))
            f_t = jax.nn.sigmoid(gx[1][t:t + 1, :] + jnp.dot(h, whh[1], preferred_element_type=f32))
            g_t = jnp.tanh(gx[2][t:t + 1, :] + jnp.dot(h, whh[2], preferred_element_type=f32))
            o_t = jax.nn.sigmoid(gx[3][t:t + 1, :] + jnp.dot(h, whh[3], preferred_element_type=f32))
            c = f_t * c + i_t * g_t
            h = o_t * jnp.tanh(c)
            hs.append(h)

        # ---- projection head: Linear -> BN(folded) -> ReLU -> Linear(+bias)
        # flatten(h_0..h_{T-1}) @ W_p1  ==  sum_t h_t @ W_p1[t*D:(t+1)*D, :]
        ph = jnp.zeros((1, H), f32)
        for t in range(Lp2):
            ph = ph + jnp.dot(hs[t], wp1_ref[t], preferred_element_type=f32)
        ph = jnp.maximum(ph * p1s_ref[...] + p1b_ref[...], 0.0)
        res = jnp.dot(ph, wp2_ref[...], preferred_element_type=f32) + bp2_ref[...]
        o_ref[0] = res                                        # (1, P)

    return kernel


# ----------------------------- forward wrapper -----------------------------

def tcn_forward(x_in, params, cfg):
    """x_in: (B, input_channels, T) (PyTorch NCW).  Returns (B, project_channels)."""
    x = jnp.transpose(x_in, (0, 2, 1)).astype(jnp.float32)    # (B, T, Cin) channels-last
    B, T, Cin = x.shape

    K1 = cfg["kernel_size"]
    cstride = cfg["stride"]
    p1 = K1 // 2
    C1 = 32
    K2, p2 = 8, 4
    D = cfg["final_out_channels"]

    L1 = (T + 2 * p1 - K1) // cstride + 1
    Lp1 = L1 // 2 + 1
    L2 = (Lp1 + 2 * p2 - K2) // 1 + 1
    Lp2 = L2 // 2 + 1
    assert Lp2 == cfg["features_len"], (Lp2, cfg["features_len"])
    H = D * Lp2 // 2
    P = cfg["project_channels"]

    # Host-side (free) weight re-layouts: per-tap conv matrices, per-gate LSTM blocks,
    # per-timestep projection chunks (folds the flatten into the weights).
    w1 = params["w_conv1"]                                    # (K1, Cin, C1)
    w2 = params["w_conv2"]                                    # (K2, C1, D)
    bn1s = params["bn1_scale"].reshape(1, C1)
    bn1b = params["bn1_shift"].reshape(1, C1)
    bn2s = params["bn2_scale"].reshape(1, D)
    bn2b = params["bn2_shift"].reshape(1, D)
    wih = params["w_ih"]                                      # (4, D, D)
    whh = params["w_hh"]                                      # (4, D, D)
    wp1 = params["w_p1"].reshape(Lp2, D, H)                   # (F, H) -> per-t chunks
    p1s = params["p1_scale"].reshape(1, H)
    p1b = params["p1_shift"].reshape(1, H)
    wp2 = params["w_p2"]                                      # (H, P)
    bp2 = params["b_p2"].reshape(1, P)

    kernel = _make_tcn_kernel(T=T, Cin=Cin, C1=C1, D=D, K1=K1, K2=K2, cstride=cstride,
                              p1=p1, p2=p2, L1=L1, Lp1=Lp1, L2=L2, Lp2=Lp2, H=H, P=P)

    def _full(arr):
        shape = arr.shape
        zero = tuple(0 for _ in shape)
        return pl.BlockSpec(shape, lambda b, _z=zero: _z)

    flops = 2 * B * (L1 * K1 * Cin * C1 + L2 * K2 * C1 * D
                     + 4 * Lp2 * D * D                       # LSTM input projection
                     + 4 * Lp2 * D * D                       # LSTM recurrence
                     + Lp2 * D * H + H * P)                  # projection head
    transcendentals = B * Lp2 * 5 * D
    bytes_accessed = 4 * (x.size + w1.size + w2.size + wih.size + whh.size
                          + wp1.size + wp2.size + B * P)

    out3 = pl.pallas_call(
        kernel,
        out_shape=jax.ShapeDtypeStruct((B, 1, P), jnp.float32),
        grid=(B,),
        in_specs=[pl.BlockSpec((1, T, Cin), lambda b: (b, 0, 0)),
                  _full(w1), _full(bn1s), _full(bn1b),
                  _full(w2), _full(bn2s), _full(bn2b),
                  _full(wih), _full(whh),
                  _full(wp1), _full(p1s), _full(p1b), _full(wp2), _full(bp2)],
        out_specs=pl.BlockSpec((1, 1, P), lambda b: (b, 0, 0)),
        scratch_shapes=[pltpu.VMEM((T + 2 * p1, Cin), jnp.float32),   # padded conv1 input
                        pltpu.VMEM((2 * Lp1, C1), jnp.float32),       # conv1 out + pool padding
                        pltpu.VMEM((Lp1 + 2 * p2, C1), jnp.float32),  # padded conv2 input
                        pltpu.VMEM((2 * Lp2, D), jnp.float32)],       # conv2 out + pool padding
        compiler_params=pltpu.CompilerParams(dimension_semantics=("parallel",)),
        cost_estimate=pl.CostEstimate(flops=flops, transcendentals=transcendentals,
                                      bytes_accessed=bytes_accessed),
    )(x, w1, bn1s, bn1b, w2, bn2s, bn2b, wih, whh, wp1, p1s, p1b, wp2, bp2)

    return out3[:, 0, :]


# ----------------------------- pure-JAX reference (correctness check) -----------------------------

def tcn_reference(x_in, params, cfg):
    """Plain-JAX (no Pallas) re-implementation of the same forward path."""
    with jax.default_matmul_precision("highest"):
        x = jnp.transpose(x_in, (0, 2, 1)).astype(jnp.float32)   # (B, T, Cin)
        B, T, Cin = x.shape
        K1 = cfg["kernel_size"]; st = cfg["stride"]; p1 = K1 // 2
        C1 = 32; K2, p2 = 8, 4
        D = cfg["final_out_channels"]
        L1 = (T + 2 * p1 - K1) // st + 1
        Lp1 = L1 // 2 + 1
        L2 = (Lp1 + 2 * p2 - K2) + 1
        Lp2 = L2 // 2 + 1

        def conv_bn_relu_pool(inp, w, scale, shift, K, pad, stride, Lout, Lpool, Cout):
            xp = jnp.pad(inp, ((0, 0), (pad, pad), (0, 0)))
            acc = jnp.zeros((B, Lout, Cout), jnp.float32)
            for k in range(K):
                acc = acc + jnp.einsum("btc,cd->btd",
                                       xp[:, k:k + stride * Lout:stride, :], w[k])
            y = jnp.maximum(acc * scale.reshape(1, 1, Cout) + shift.reshape(1, 1, Cout), 0.0)
            yp = jnp.pad(y, ((0, 0), (1, 2 * Lpool - Lout - 1), (0, 0)))
            return jnp.max(yp.reshape(B, Lpool, 2, Cout), axis=2)

        h1 = conv_bn_relu_pool(x, params["w_conv1"], params["bn1_scale"], params["bn1_shift"],
                               K1, p1, st, L1, Lp1, C1)
        hidden = conv_bn_relu_pool(h1, params["w_conv2"], params["bn2_scale"], params["bn2_shift"],
                                   K2, p2, 1, L2, Lp2, D)

        wih, whh = params["w_ih"], params["w_hh"]
        h = jnp.zeros((B, D), jnp.float32)
        c = jnp.zeros((B, D), jnp.float32)
        outs = []
        for t in range(Lp2):
            xt = hidden[:, t, :]
            i_t = jax.nn.sigmoid(xt @ wih[0] + h @ whh[0])
            f_t = jax.nn.sigmoid(xt @ wih[1] + h @ whh[1])
            g_t = jnp.tanh(xt @ wih[2] + h @ whh[2])
            o_t = jax.nn.sigmoid(xt @ wih[3] + h @ whh[3])
            c = f_t * c + i_t * g_t
            h = o_t * jnp.tanh(c)
            outs.append(h)
        flat = jnp.concatenate(outs, axis=-1)       # t-major flatten == torch .reshape(B, -1)
        ph = flat @ params["w_p1"]
        ph = jnp.maximum(ph * params["p1_scale"] + params["p1_shift"], 0.0)
        return ph @ params["w_p2"] + params["b_p2"]


# ----------------------------- setup / main -----------------------------

def make_params(cfg, key):
    Cin = cfg["input_channels"]
    K = cfg["kernel_size"]
    D = cfg["final_out_channels"]
    FL = cfg["features_len"]
    P = cfg["project_channels"]
    eps = 1e-5
    ks = jax.random.split(key, 8)

    # Conv weights stored as (K, Cin, Cout) -> per-tap (Cin, Cout) matmul matrices.
    w_conv1 = 0.1 * jax.random.normal(ks[0], (K, Cin, 32), jnp.float32)
    w_conv2 = 0.1 * jax.random.normal(ks[1], (8, 32, D), jnp.float32)

    # BatchNorm (fresh PyTorch init, eval mode): gamma=1, beta=0, mean=0, var=1.
    bn_scale = jnp.float32(1.0 / jnp.sqrt(1.0 + eps))
    bn1_scale = jnp.full((32,), bn_scale, jnp.float32)
    bn1_shift = jnp.zeros((32,), jnp.float32)
    bn2_scale = jnp.full((D,), bn_scale, jnp.float32)
    bn2_shift = jnp.zeros((D,), jnp.float32)

    # LSTM (input = hidden = D, bias=False), per-gate blocks in order i, f, g, o:
    # gate_g pre-activation = x @ w_ih[g] + h @ w_hh[g].
    w_ih = 0.1 * jax.random.normal(ks[2], (4, D, D), jnp.float32)
    w_hh = 0.1 * jax.random.normal(ks[3], (4, D, D), jnp.float32)

    # projection head: Linear(D*FL -> D*FL//2) + BN + ReLU + Linear(-> P)
    F = D * FL
    H = F // 2
    w_p1 = 0.1 * jax.random.normal(ks[4], (F, H), jnp.float32)
    b_p1 = 0.1 * jax.random.normal(ks[5], (H,), jnp.float32)
    w_p2 = 0.1 * jax.random.normal(ks[6], (H, P), jnp.float32)
    b_p2 = 0.1 * jax.random.normal(ks[7], (P,), jnp.float32)
    # Fold the first Linear's bias through eval-mode BatchNorm: BN(xW+b) = (xW)*s + b*s.
    p1_scale = jnp.full((H,), bn_scale, jnp.float32)
    p1_shift = b_p1 * bn_scale

    return dict(w_conv1=w_conv1, w_conv2=w_conv2,
                bn1_scale=bn1_scale, bn1_shift=bn1_shift,
                bn2_scale=bn2_scale, bn2_shift=bn2_shift,
                w_ih=w_ih, w_hh=w_hh,
                w_p1=w_p1, p1_scale=p1_scale, p1_shift=p1_shift,
                w_p2=w_p2, b_p2=b_p2)


if __name__ == "__main__":
    # Small self-consistent config (T=16 -> conv1/pool -> 9 -> conv2/pool -> 6 = features_len).
    cfg = dict(input_channels=4, kernel_size=8, stride=1,
               final_out_channels=16, features_len=6,
               project_channels=8, num_layers=1, dropout=0.0)

    key = jax.random.PRNGKey(0)
    k_params, k_x = jax.random.split(key)
    params = make_params(cfg, k_params)

    x_in = jax.random.normal(k_x, (2, cfg["input_channels"], 16), jnp.float32)  # (B, C, T)

    fwd = jax.jit(lambda xx: tcn_forward(xx, params, cfg))
    out = jax.block_until_ready(fwd(x_in))

    assert out.shape == (2, cfg["project_channels"]), out.shape
    assert bool(jnp.all(jnp.isfinite(out)))

    # Numerical check against a plain-JAX reference of the same forward path.
    ref = jax.block_until_ready(tcn_reference(x_in, params, cfg))
    assert ref.shape == out.shape, (ref.shape, out.shape)
    assert bool(jnp.allclose(out, ref, atol=2e-3, rtol=2e-3)), (
        float(jnp.max(jnp.abs(out - ref))))

    print("KERNEL_OK")
</pallas_src>

<mosaic_0001>
module attributes {stable_mosaic.version = 11 : i64} {
  func.func @kernel(%arg0: i32, %arg1: memref<1x16x4xf32, #tpu.memory_space<vmem>>, %arg2: memref<8x4x32xf32, #tpu.memory_space<vmem>>, %arg3: memref<1x32xf32, #tpu.memory_space<vmem>>, %arg4: memref<1x32xf32, #tpu.memory_space<vmem>>, %arg5: memref<8x32x16xf32, #tpu.memory_space<vmem>>, %arg6: memref<1x16xf32, #tpu.memory_space<vmem>>, %arg7: memref<1x16xf32, #tpu.memory_space<vmem>>, %arg8: memref<4x16x16xf32, #tpu.memory_space<vmem>>, %arg9: memref<4x16x16xf32, #tpu.memory_space<vmem>>, %arg10: memref<6x16x48xf32, #tpu.memory_space<vmem>>, %arg11: memref<1x48xf32, #tpu.memory_space<vmem>>, %arg12: memref<1x48xf32, #tpu.memory_space<vmem>>, %arg13: memref<48x8xf32, #tpu.memory_space<vmem>>, %arg14: memref<1x8xf32, #tpu.memory_space<vmem>>, %arg15: memref<1x1x8xf32, #tpu.memory_space<vmem>>, %arg16: memref<24x4xf32, #tpu.memory_space<vmem>>, %arg17: memref<18x32xf32, #tpu.memory_space<vmem>>, %arg18: memref<17x32xf32, #tpu.memory_space<vmem>>, %arg19: memref<12x16xf32, #tpu.memory_space<vmem>>) attributes {dimension_semantics = [#tpu.dimension_semantics<parallel>], iteration_bounds = array<i64: 2>, scalar_prefetch = 0 : i64, scratch_operands = 4 : i64, tpu.core_type = #tpu.core_type<tc>, window_params = [{transform_indices = @transform_0, window_bounds = array<i64: 1, 16, 4>}, {pipeline_mode = #tpu.pipeline_mode<synchronous>, transform_indices = @transform_1, window_bounds = array<i64: 8, 4, 32>}, {pipeline_mode = #tpu.pipeline_mode<synchronous>, transform_indices = @transform_2, window_bounds = array<i64: 1, 32>}, {pipeline_mode = #tpu.pipeline_mode<synchronous>, transform_indices = @transform_3, window_bounds = array<i64: 1, 32>}, {pipeline_mode = #tpu.pipeline_mode<synchronous>, transform_indices = @transform_4, window_bounds = array<i64: 8, 32, 16>}, {pipeline_mode = #tpu.pipeline_mode<synchronous>, transform_indices = @transform_5, window_bounds = array<i64: 1, 16>}, {pipeline_mode = #tpu.pipeline_mode<synchronous>, transform_indices = @transform_6, window_bounds = array<i64: 1, 16>}, {pipeline_mode = #tpu.pipeline_mode<synchronous>, transform_indices = @transform_7, window_bounds = array<i64: 4, 16, 16>}, {pipeline_mode = #tpu.pipeline_mode<synchronous>, transform_indices = @transform_8, window_bounds = array<i64: 4, 16, 16>}, {pipeline_mode = #tpu.pipeline_mode<synchronous>, transform_indices = @transform_9, window_bounds = array<i64: 6, 16, 48>}, {pipeline_mode = #tpu.pipeline_mode<synchronous>, transform_indices = @transform_10, window_bounds = array<i64: 1, 48>}, {pipeline_mode = #tpu.pipeline_mode<synchronous>, transform_indices = @transform_11, window_bounds = array<i64: 1, 48>}, {pipeline_mode = #tpu.pipeline_mode<synchronous>, transform_indices = @transform_12, window_bounds = array<i64: 48, 8>}, {pipeline_mode = #tpu.pipeline_mode<synchronous>, transform_indices = @transform_13, window_bounds = array<i64: 1, 8>}, {transform_indices = @transform_14, window_bounds = array<i64: 1, 1, 8>}]} {
    %cst = arith.constant 0.000000e+00 : f32
    %0 = vector.broadcast %cst : f32 to vector<24x4xf32>
    %c0 = arith.constant 0 : index
    %c0_0 = arith.constant 0 : index
    %1 = vector.load %arg16[%c0, %c0_0] : memref<24x4xf32, #tpu.memory_space<vmem>>, vector<24x4xf32>
    tpu.vector_store %arg16[%c0, %c0_0], %0 {strides = array<i32>} : memref<24x4xf32, #tpu.memory_space<vmem>>, vector<24x4xf32>,
    %c0_1 = arith.constant 0 : index
    %c0_2 = arith.constant 0 : index
    %c0_3 = arith.constant 0 : index
    %2 = vector.load %arg1[%c0_1, %c0_2, %c0_3] : memref<1x16x4xf32, #tpu.memory_space<vmem>>, vector<1x16x4xf32>
    %3 = vector.shape_cast %2 : vector<1x16x4xf32> to vector<16x4xf32>
    %c4 = arith.constant 4 : index
    %c0_4 = arith.constant 0 : index
    %4 = vector.load %arg16[%c4, %c0_4] : memref<24x4xf32, #tpu.memory_space<vmem>>, vector<16x4xf32>
    tpu.vector_store %arg16[%c4, %c0_4], %3 {strides = array<i32>} : memref<24x4xf32, #tpu.memory_space<vmem>>, vector<16x4xf32>,
    %cst_5 = arith.constant 0.000000e+00 : f32
    %5 = vector.broadcast %cst_5 : f32 to vector<17x32xf32>
    %c0_6 = arith.constant 0 : index
    %c0_7 = arith.constant 0 : index
    %6 = vector.load %arg16[%c0_6, %c0_7] : memref<24x4xf32, #tpu.memory_space<vmem>>, vector<17x4xf32>
    %c0_8 = arith.constant 0 : index
    %c0_9 = arith.constant 0 : index
    %c0_10 = arith.constant 0 : index
    %7 = vector.load %arg2[%c0_8, %c0_9, %c0_10] : memref<8x4x32xf32, #tpu.memory_space<vmem>>, vector<1x4x32xf32>
    %8 = vector.shape_cast %7 : vector<1x4x32xf32> to vector<4x32xf32>
    %cst_11 = arith.constant dense<0.000000e+00> : vector<17x32xf32>
    %9 = tpu.matmul %6, %8, %cst_11 {dimension_numbers = #tpu.dot_dimension_numbers<[1], [0], [0], [1], [0, 0, 1, 1], [], []>} : vector<17x4xf32>, vector<4x32xf32>, vector<17x32xf32> -> vector<17x32xf32>
    %10 = arith.addf %5, %9 : vector<17x32xf32>
    %c1 = arith.constant 1 : index
    %c0_12 = arith.constant 0 : index
    %11 = vector.load %arg16[%c1, %c0_12] : memref<24x4xf32, #tpu.memory_space<vmem>>, vector<17x4xf32>
    %c1_13 = arith.constant 1 : index
    %c0_14 = arith.constant 0 : index
    %c0_15 = arith.constant 0 : index
    %12 = vector.load %arg2[%c1_13, %c0_14, %c0_15] : memref<8x4x32xf32, #tpu.memory_space<vmem>>, vector<1x4x32xf32>
    %13 = vector.shape_cast %12 : vector<1x4x32xf32> to vector<4x32xf32>
    %cst_16 = arith.constant dense<0.000000e+00> : vector<17x32xf32>
    %14 = tpu.matmul %11, %13, %cst_16 {dimension_numbers = #tpu.dot_dimension_numbers<[1], [0], [0], [1], [0, 0, 1, 1], [], []>} : vector<17x4xf32>, vector<4x32xf32>, vector<17x32xf32> -> vector<17x32xf32>
    %15 = arith.addf %10, %14 : vector<17x32xf32>
    %c2 = arith.constant 2 : index
    %c0_17 = arith.constant 0 : index
    %16 = vector.load %arg16[%c2, %c0_17] : memref<24x4xf32, #tpu.memory_space<vmem>>, vector<17x4xf32>
    %c2_18 = arith.constant 2 : index
    %c0_19 = arith.constant 0 : index
    %c0_20 = arith.constant 0 : index
    %17 = vector.load %arg2[%c2_18, %c0_19, %c0_20] : memref<8x4x32xf32, #tpu.memory_space<vmem>>, vector<1x4x32xf32>
    %18 = vector.shape_cast %17 : vector<1x4x32xf32> to vector<4x32xf32>
    %cst_21 = arith.constant dense<0.000000e+00> : vector<17x32xf32>
    %19 = tpu.matmul %16, %18, %cst_21 {dimension_numbers = #tpu.dot_dimension_numbers<[1], [0], [0], [1], [0, 0, 1, 1], [], []>} : vector<17x4xf32>, vector<4x32xf32>, vector<17x32xf32> -> vector<17x32xf32>
    %20 = arith.addf %15, %19 : vector<17x32xf32>
    %c3 = arith.constant 3 : index
    %c0_22 = arith.constant 0 : index
    %21 = vector.load %arg16[%c3, %c0_22] : memref<24x4xf32, #tpu.memory_space<vmem>>, vector<17x4xf32>
    %c3_23 = arith.constant 3 : index
    %c0_24 = arith.constant 0 : index
    %c0_25 = arith.constant 0 : index
    %22 = vector.load %arg2[%c3_23, %c0_24, %c0_25] : memref<8x4x32xf32, #tpu.memory_space<vmem>>, vector<1x4x32xf32>
    %23 = vector.shape_cast %22 : vector<1x4x32xf32> to vector<4x32xf32>
    %cst_26 = arith.constant dense<0.000000e+00> : vector<17x32xf32>
    %24 = tpu.matmul %21, %23, %cst_26 {dimension_numbers = #tpu.dot_dimension_numbers<[1], [0], [0], [1], [0, 0, 1, 1], [], []>} : vector<17x4xf32>, vector<4x32xf32>, vector<17x32xf32> -> vector<17x32xf32>
    %25 = arith.addf %20, %24 : vector<17x32xf32>
    %c4_27 = arith.constant 4 : index
    %c0_28 = arith.constant 0 : index
    %26 = vector.load %arg16[%c4_27, %c0_28] : memref<24x4xf32, #tpu.memory_space<vmem>>, vector<17x4xf32>
    %c4_29 = arith.constant 4 : index
    %c0_30 = arith.constant 0 : index
    %c0_31 = arith.constant 0 : index
    %27 = vector.load %arg2[%c4_29, %c0_30, %c0_31] : memref<8x4x32xf32, #tpu.memory_space<vmem>>, vector<1x4x32xf32>
    %28 = vector.shape_cast %27 : vector<1x4x32xf32> to vector<4x32xf32>
    %cst_32 = arith.constant dense<0.000000e+00> : vector<17x32xf32>
    %29 = tpu.matmul %26, %28, %cst_32 {dimension_numbers = #tpu.dot_dimension_numbers<[1], [0], [0], [1], [0, 0, 1, 1], [], []>} : vector<17x4xf32>, vector<4x32xf32>, vector<17x32xf32> -> vector<17x32xf32>
    %30 = arith.addf %25, %29 : vector<17x32xf32>
    %c5 = arith.constant 5 : index
    %c0_33 = arith.constant 0 : index
    %31 = vector.load %arg16[%c5, %c0_33] : memref<24x4xf32, #tpu.memory_space<vmem>>, vector<17x4xf32>
    %c5_34 = arith.constant 5 : index
    %c0_35 = arith.constant 0 : index
    %c0_36 = arith.constant 0 : index
    %32 = vector.load %arg2[%c5_34, %c0_35, %c0_36] : memref<8x4x32xf32, #tpu.memory_space<vmem>>, vector<1x4x32xf32>
    %33 = vector.shape_cast %32 : vector<1x4x32xf32> to vector<4x32xf32>
    %cst_37 = arith.constant dense<0.000000e+00> : vector<17x32xf32>
    %34 = tpu.matmul %31, %33, %cst_37 {dimension_numbers = #tpu.dot_dimension_numbers<[1], [0], [0], [1], [0, 0, 1, 1], [], []>} : vector<17x4xf32>, vector<4x32xf32>, vector<17x32xf32> -> vector<17x32xf32>
    %35 = arith.addf %30, %34 : vector<17x32xf32>
    %c6 = arith.constant 6 : index
    %c0_38 = arith.constant 0 : index
    %36 = vector.load %arg16[%c6, %c0_38] : memref<24x4xf32, #tpu.memory_space<vmem>>, vector<17x4xf32>
    %c6_39 = arith.constant 6 : index
    %c0_40 = arith.constant 0 : index
    %c0_41 = arith.constant 0 : index
    %37 = vector.load %arg2[%c6_39, %c0_40, %c0_41] : memref<8x4x32xf32, #tpu.memory_space<vmem>>, vector<1x4x32xf32>
    %38 = vector.shape_cast %37 : vector<1x4x32xf32> to vector<4x32xf32>
    %cst_42 = arith.constant dense<0.000000e+00> : vector<17x32xf32>
    %39 = tpu.matmul %36, %38, %cst_42 {dimension_numbers = #tpu.dot_dimension_numbers<[1], [0], [0], [1], [0, 0, 1, 1], [], []>} : vector<17x4xf32>, vector<4x32xf32>, vector<17x32xf32> -> vector<17x32xf32>
    %40 = arith.addf %35, %39 : vector<17x32xf32>
    %c7 = arith.constant 7 : index
    %c0_43 = arith.constant 0 : index
    %41 = vector.load %arg16[%c7, %c0_43] : memref<24x4xf32, #tpu.memory_space<vmem>>, vector<17x4xf32>
    %c7_44 = arith.constant 7 : index
    %c0_45 = arith.constant 0 : index
    %c0_46 = arith.constant 0 : index
    %42 = vector.load %arg2[%c7_44, %c0_45, %c0_46] : memref<8x4x32xf32, #tpu.memory_space<vmem>>, vector<1x4x32xf32>
    %43 = vector.shape_cast %42 : vector<1x4x32xf32> to vector<4x32xf32>
    %cst_47 = arith.constant dense<0.000000e+00> : vector<17x32xf32>
    %44 = tpu.matmul %41, %43, %cst_47 {dimension_numbers = #tpu.dot_dimension_numbers<[1], [0], [0], [1], [0, 0, 1, 1], [], []>} : vector<17x4xf32>, vector<4x32xf32>, vector<17x32xf32> -> vector<17x32xf32>
    %45 = arith.addf %40, %44 : vector<17x32xf32>
    %c0_48 = arith.constant 0 : index
    %c0_49 = arith.constant 0 : index
    %46 = vector.load %arg3[%c0_48, %c0_49] : memref<1x32xf32, #tpu.memory_space<vmem>>, vector<1x32xf32>
    %47 = vector.broadcast %46 : vector<1x32xf32> to vector<17x32xf32>
    %48 = arith.mulf %45, %47 : vector<17x32xf32>
    %c0_50 = arith.constant 0 : index
    %c0_51 = arith.constant 0 : index
    %49 = vector.load %arg4[%c0_50, %c0_51] : memref<1x32xf32, #tpu.memory_space<vmem>>, vector<1x32xf32>
    %50 = vector.broadcast %49 : vector<1x32xf32> to vector<17x32xf32>
    %51 = arith.addf %48, %50 : vector<17x32xf32>
    %cst_52 = arith.constant 0.000000e+00 : f32
    %52 = vector.broadcast %cst_52 : f32 to vector<17x32xf32>
    %53 = arith.maximumf %51, %52 : vector<17x32xf32>
    %cst_53 = arith.constant 0.000000e+00 : f32
    %54 = vector.broadcast %cst_53 : f32 to vector<18x32xf32>
    %c0_54 = arith.constant 0 : index
    %c0_55 = arith.constant 0 : index
    %55 = vector.load %arg17[%c0_54, %c0_55] : memref<18x32xf32, #tpu.memory_space<vmem>>, vector<18x32xf32>
    tpu.vector_store %arg17[%c0_54, %c0_55], %54 {strides = array<i32>} : memref<18x32xf32, #tpu.memory_space<vmem>>, vector<18x32xf32>,
    %c1_56 = arith.constant 1 : index
    %c0_57 = arith.constant 0 : index
    %56 = vector.load %arg17[%c1_56, %c0_57] : memref<18x32xf32, #tpu.memory_space<vmem>>, vector<17x32xf32>
    tpu.vector_store %arg17[%c1_56, %c0_57], %53 {strides = array<i32>} : memref<18x32xf32, #tpu.memory_space<vmem>>, vector<17x32xf32>,
    %c0_58 = arith.constant 0 : index
    %c0_59 = arith.constant 0 : index
    %57 = tpu.strided_load %arg17[%c0_58, %c0_59] {strides = array<i32: 2, 1>} : memref<18x32xf32, #tpu.memory_space<vmem>>, vector<9x32xf32>
    %c1_60 = arith.constant 1 : index
    %c0_61 = arith.constant 0 : index
    %58 = tpu.strided_load %arg17[%c1_60, %c0_61] {strides = array<i32: 2, 1>} : memref<18x32xf32, #tpu.memory_space<vmem>>, vector<9x32xf32>
    %59 = arith.maximumf %57, %58 : vector<9x32xf32>
    %cst_62 = arith.constant 0.000000e+00 : f32
    %60 = vector.broadcast %cst_62 : f32 to vector<17x32xf32>
    %c0_63 = arith.constant 0 : index
    %c0_64 = arith.constant 0 : index
    %61 = vector.load %arg18[%c0_63, %c0_64] : memref<17x32xf32, #tpu.memory_space<vmem>>, vector<17x32xf32>
    tpu.vector_store %arg18[%c0_63, %c0_64], %60 {strides = array<i32>} : memref<17x32xf32, #tpu.memory_space<vmem>>, vector<17x32xf32>,
    %c4_65 = arith.constant 4 : index
    %c0_66 = arith.constant 0 : index
    %62 = vector.load %arg18[%c4_65, %c0_66] : memref<17x32xf32, #tpu.memory_space<vmem>>, vector<9x32xf32>
    tpu.vector_store %arg18[%c4_65, %c0_66], %59 {strides = array<i32>} : memref<17x32xf32, #tpu.memory_space<vmem>>, vector<9x32xf32>,
    %cst_67 = arith.constant 0.000000e+00 : f32
    %63 = vector.broadcast %cst_67 : f32 to vector<10x16xf32>
    %c0_68 = arith.constant 0 : index
    %c0_69 = arith.constant 0 : index
    %64 = vector.load %arg18[%c0_68, %c0_69] : memref<17x32xf32, #tpu.memory_space<vmem>>, vector<10x32xf32>
    %c0_70 = arith.constant 0 : index
    %c0_71 = arith.constant 0 : index
    %c0_72 = arith.constant 0 : index
    %65 = vector.load %arg5[%c0_70, %c0_71, %c0_72] : memref<8x32x16xf32, #tpu.memory_space<vmem>>, vector<1x32x16xf32>
    %66 = vector.shape_cast %65 : vector<1x32x16xf32> to vector<32x16xf32>
    %cst_73 = arith.constant dense<0.000000e+00> : vector<10x16xf32>
    %67 = tpu.matmul %64, %66, %cst_73 {dimension_numbers = #tpu.dot_dimension_numbers<[1], [0], [0], [1], [0, 0, 1, 1], [], []>} : vector<10x32xf32>, vector<32x16xf32>, vector<10x16xf32> -> vector<10x16xf32>
    %68 = arith.addf %63, %67 : vector<10x16xf32>
    %c1_74 = arith.constant 1 : index
    %c0_75 = arith.constant 0 : index
    %69 = vector.load %arg18[%c1_74, %c0_75] : memref<17x32xf32, #tpu.memory_space<vmem>>, vector<10x32xf32>
    %c1_76 = arith.constant 1 : index
    %c0_77 = arith.constant 0 : index
    %c0_78 = arith.constant 0 : index
    %70 = vector.load %arg5[%c1_76, %c0_77, %c0_78] : memref<8x32x16xf32, #tpu.memory_space<vmem>>, vector<1x32x16xf32>
    %71 = vector.shape_cast %70 : vector<1x32x16xf32> to vector<32x16xf32>
    %cst_79 = arith.constant dense<0.000000e+00> : vector<10x16xf32>
    %72 = tpu.matmul %69, %71, %cst_79 {dimension_numbers = #tpu.dot_dimension_numbers<[1], [0], [0], [1], [0, 0, 1, 1], [], []>} : vector<10x32xf32>, vector<32x16xf32>, vector<10x16xf32> -> vector<10x16xf32>
    %73 = arith.addf %68, %72 : vector<10x16xf32>
    %c2_80 = arith.constant 2 : index
    %c0_81 = arith.constant 0 : index
    %74 = vector.load %arg18[%c2_80, %c0_81] : memref<17x32xf32, #tpu.memory_space<vmem>>, vector<10x32xf32>
    %c2_82 = arith.constant 2 : index
    %c0_83 = arith.constant 0 : index
    %c0_84 = arith.constant 0 : index
    %75 = vector.load %arg5[%c2_82, %c0_83, %c0_84] : memref<8x32x16xf32, #tpu.memory_space<vmem>>, vector<1x32x16xf32>
    %76 = vector.shape_cast %75 : vector<1x32x16xf32> to vector<32x16xf32>
    %cst_85 = arith.constant dense<0.000000e+00> : vector<10x16xf32>
    %77 = tpu.matmul %74, %76, %cst_85 {dimension_numbers = #tpu.dot_dimension_numbers<[1], [0], [0], [1], [0, 0, 1, 1], [], []>} : vector<10x32xf32>, vector<32x16xf32>, vector<10x16xf32> -> vector<10x16xf32>
    %78 = arith.addf %73, %77 : vector<10x16xf32>
    %c3_86 = arith.constant 3 : index
    %c0_87 = arith.constant 0 : index
    %79 = vector.load %arg18[%c3_86, %c0_87] : memref<17x32xf32, #tpu.memory_space<vmem>>, vector<10x32xf32>
    %c3_88 = arith.constant 3 : index
    %c0_89 = arith.constant 0 : index
    %c0_90 = arith.constant 0 : index
    %80 = vector.load %arg5[%c3_88, %c0_89, %c0_90] : memref<8x32x16xf32, #tpu.memory_space<vmem>>, vector<1x32x16xf32>
    %81 = vector.shape_cast %80 : vector<1x32x16xf32> to vector<32x16xf32>
    %cst_91 = arith.constant dense<0.000000e+00> : vector<10x16xf32>
    %82 = tpu.matmul %79, %81, %cst_91 {dimension_numbers = #tpu.dot_dimension_numbers<[1], [0], [0], [1], [0, 0, 1, 1], [], []>} : vector<10x32xf32>, vector<32x16xf32>, vector<10x16xf32> -> vector<10x16xf32>
    %83 = arith.addf %78, %82 : vector<10x16xf32>
    %c4_92 = arith.constant 4 : index
    %c0_93 = arith.constant 0 : index
    %84 = vector.load %arg18[%c4_92, %c0_93] : memref<17x32xf32, #tpu.memory_space<vmem>>, vector<10x32xf32>
    %c4_94 = arith.constant 4 : index
    %c0_95 = arith.constant 0 : index
    %c0_96 = arith.constant 0 : index
    %85 = vector.load %arg5[%c4_94, %c0_95, %c0_96] : memref<8x32x16xf32, #tpu.memory_space<vmem>>, vector<1x32x16xf32>
    %86 = vector.shape_cast %85 : vector<1x32x16xf32> to vector<32x16xf32>
    %cst_97 = arith.constant dense<0.000000e+00> : vector<10x16xf32>
    %87 = tpu.matmul %84, %86, %cst_97 {dimension_numbers = #tpu.dot_dimension_numbers<[1], [0], [0], [1], [0, 0, 1, 1], [], []>} : vector<10x32xf32>, vector<32x16xf32>, vector<10x16xf32> -> vector<10x16xf32>
    %88 = arith.addf %83, %87 : vector<10x16xf32>
    %c5_98 = arith.constant 5 : index
    %c0_99 = arith.constant 0 : index
    %89 = vector.load %arg18[%c5_98, %c0_99] : memref<17x32xf32, #tpu.memory_space<vmem>>, vector<10x32xf32>
    %c5_100 = arith.constant 5 : index
    %c0_101 = arith.constant 0 : index
    %c0_102 = arith.constant 0 : index
    %90 = vector.load %arg5[%c5_100, %c0_101, %c0_102] : memref<8x32x16xf32, #tpu.memory_space<vmem>>, vector<1x32x16xf32>
    %91 = vector.shape_cast %90 : vector<1x32x16xf32> to vector<32x16xf32>
    %cst_103 = arith.constant dense<0.000000e+00> : vector<10x16xf32>
    %92 = tpu.matmul %89, %91, %cst_103 {dimension_numbers = #tpu.dot_dimension_numbers<[1], [0], [0], [1], [0, 0, 1, 1], [], []>} : vector<10x32xf32>, vector<32x16xf32>, vector<10x16xf32> -> vector<10x16xf32>
    %93 = arith.addf %88, %92 : vector<10x16xf32>
    %c6_104 = arith.constant 6 : index
    %c0_105 = arith.constant 0 : index
    %94 = vector.load %arg18[%c6_104, %c0_105] : memref<17x32xf32, #tpu.memory_space<vmem>>, vector<10x32xf32>
    %c6_106 = arith.constant 6 : index
    %c0_107 = arith.constant 0 : index
    %c0_108 = arith.constant 0 : index
    %95 = vector.load %arg5[%c6_106, %c0_107, %c0_108] : memref<8x32x16xf32, #tpu.memory_space<vmem>>, vector<1x32x16xf32>
    %96 = vector.shape_cast %95 : vector<1x32x16xf32> to vector<32x16xf32>
    %cst_109 = arith.constant dense<0.000000e+00> : vector<10x16xf32>
    %97 = tpu.matmul %94, %96, %cst_109 {dimension_numbers = #tpu.dot_dimension_numbers<[1], [0], [0], [1], [0, 0, 1, 1], [], []>} : vector<10x32xf32>, vector<32x16xf32>, vector<10x16xf32> -> vector<10x16xf32>
    %98 = arith.addf %93, %97 : vector<10x16xf32>
    %c7_110 = arith.constant 7 : index
    %c0_111 = arith.constant 0 : index
    %99 = vector.load %arg18[%c7_110, %c0_111] : memref<17x32xf32, #tpu.memory_space<vmem>>, vector<10x32xf32>
    %c7_112 = arith.constant 7 : index
    %c0_113 = arith.constant 0 : index
    %c0_114 = arith.constant 0 : index
    %100 = vector.load %arg5[%c7_112, %c0_113, %c0_114] : memref<8x32x16xf32, #tpu.memory_space<vmem>>, vector<1x32x16xf32>
    %101 = vector.shape_cast %100 : vector<1x32x16xf32> to vector<32x16xf32>
    %cst_115 = arith.constant dense<0.000000e+00> : vector<10x16xf32>
    %102 = tpu.matmul %99, %101, %cst_115 {dimension_numbers = #tpu.dot_dimension_numbers<[1], [0], [0], [1], [0, 0, 1, 1], [], []>} : vector<10x32xf32>, vector<32x16xf32>, vector<10x16xf32> -> vector<10x16xf32>
    %103 = arith.addf %98, %102 : vector<10x16xf32>
    %c0_116 = arith.constant 0 : index
    %c0_117 = arith.constant 0 : index
    %104 = vector.load %arg6[%c0_116, %c0_117] : memref<1x16xf32, #tpu.memory_space<vmem>>, vector<1x16xf32>
    %105 = vector.broadcast %104 : vector<1x16xf32> to vector<10x16xf32>
    %106 = arith.mulf %103, %105 : vector<10x16xf32>
    %c0_118 = arith.constant 0 : index
    %c0_119 = arith.constant 0 : index
    %107 = vector.load %arg7[%c0_118, %c0_119] : memref<1x16xf32, #tpu.memory_space<vmem>>, vector<1x16xf32>
    %108 = vector.broadcast %107 : vector<1x16xf32> to vector<10x16xf32>
    %109 = arith.addf %106, %108 : vector<10x16xf32>
    %cst_120 = arith.constant 0.000000e+00 : f32
    %110 = vector.broadcast %cst_120 : f32 to vector<10x16xf32>
    %111 = arith.maximumf %109, %110 : vector<10x16xf32>
    %cst_121 = arith.constant 0.000000e+00 : f32
    %112 = vector.broadcast %cst_121 : f32 to vector<12x16xf32>
    %c0_122 = arith.constant 0 : index
    %c0_123 = arith.constant 0 : index
    %113 = vector.load %arg19[%c0_122, %c0_123] : memref<12x16xf32, #tpu.memory_space<vmem>>, vector<12x16xf32>
    tpu.vector_store %arg19[%c0_122, %c0_123], %112 {strides = array<i32>} : memref<12x16xf32, #tpu.memory_space<vmem>>, vector<12x16xf32>,
    %c1_124 = arith.constant 1 : index
    %c0_125 = arith.constant 0 : index
    %114 = vector.load %arg19[%c1_124, %c0_125] : memref<12x16xf32, #tpu.memory_space<vmem>>, vector<10x16xf32>
    tpu.vector_store %arg19[%c1_124, %c0_125], %111 {strides = array<i32>} : memref<12x16xf32, #tpu.memory_space<vmem>>, vector<10x16xf32>,
    %c0_126 = arith.constant 0 : index
    %c0_127 = arith.constant 0 : index
    %115 = tpu.strided_load %arg19[%c0_126, %c0_127] {strides = array<i32: 2, 1>} : memref<12x16xf32, #tpu.memory_space<vmem>>, vector<6x16xf32>
    %c1_128 = arith.constant 1 : index
    %c0_129 = arith.constant 0 : index
    %116 = tpu.strided_load %arg19[%c1_128, %c0_129] {strides = array<i32: 2, 1>} : memref<12x16xf32, #tpu.memory_space<vmem>>, vector<6x16xf32>
    %117 = arith.maximumf %115, %116 : vector<6x16xf32>
    %c0_130 = arith.constant 0 : index
    %c0_131 = arith.constant 0 : index
    %c0_132 = arith.constant 0 : index
    %118 = vector.load %arg8[%c0_130, %c0_131, %c0_132] : memref<4x16x16xf32, #tpu.memory_space<vmem>>, vector<1x16x16xf32>
    %119 = vector.shape_cast %118 : vector<1x16x16xf32> to vector<16x16xf32>
    %c1_133 = arith.constant 1 : index
    %c0_134 = arith.constant 0 : index
    %c0_135 = arith.constant 0 : index
    %120 = vector.load %arg8[%c1_133, %c0_134, %c0_135] : memref<4x16x16xf32, #tpu.memory_space<vmem>>, vector<1x16x16xf32>
    %121 = vector.shape_cast %120 : vector<1x16x16xf32> to vector<16x16xf32>
    %c2_136 = arith.constant 2 : index
    %c0_137 = arith.constant 0 : index
    %c0_138 = arith.constant 0 : index
    %122 = vector.load %arg8[%c2_136, %c0_137, %c0_138] : memref<4x16x16xf32, #tpu.memory_space<vmem>>, vector<1x16x16xf32>
    %123 = vector.shape_cast %122 : vector<1x16x16xf32> to vector<16x16xf32>
    %c3_139 = arith.constant 3 : index
    %c0_140 = arith.constant 0 : index
    %c0_141 = arith.constant 0 : index
    %124 = vector.load %arg8[%c3_139, %c0_140, %c0_141] : memref<4x16x16xf32, #tpu.memory_space<vmem>>, vector<1x16x16xf32>
    %125 = vector.shape_cast %124 : vector<1x16x16xf32> to vector<16x16xf32>
    %c0_142 = arith.constant 0 : index
    %c0_143 = arith.constant 0 : index
    %c0_144 = arith.constant 0 : index
    %126 = vector.load %arg9[%c0_142, %c0_143, %c0_144] : memref<4x16x16xf32, #tpu.memory_space<vmem>>, vector<1x16x16xf32>
    %127 = vector.shape_cast %126 : vector<1x16x16xf32> to vector<16x16xf32>
    %c1_145 = arith.constant 1 : index
    %c0_146 = arith.constant 0 : index
    %c0_147 = arith.constant 0 : index
    %128 = vector.load %arg9[%c1_145, %c0_146, %c0_147] : memref<4x16x16xf32, #tpu.memory_space<vmem>>, vector<1x16x16xf32>
    %129 = vector.shape_cast %128 : vector<1x16x16xf32> to vector<16x16xf32>
    %c2_148 = arith.constant 2 : index
    %c0_149 = arith.constant 0 : index
    %c0_150 = arith.constant 0 : index
    %130 = vector.load %arg9[%c2_148, %c0_149, %c0_150] : memref<4x16x16xf32, #tpu.memory_space<vmem>>, vector<1x16x16xf32>
    %131 = vector.shape_cast %130 : vector<1x16x16xf32> to vector<16x16xf32>
    %c3_151 = arith.constant 3 : index
    %c0_152 = arith.constant 0 : index
    %c0_153 = arith.constant 0 : index
    %132 = vector.load %arg9[%c3_151, %c0_152, %c0_153] : memref<4x16x16xf32, #tpu.memory_space<vmem>>, vector<1x16x16xf32>
    %133 = vector.shape_cast %132 : vector<1x16x16xf32> to vector<16x16xf32>
    %cst_154 = arith.constant dense<0.000000e+00> : vector<6x16xf32>
    %134 = tpu.matmul %117, %119, %cst_154 {dimension_numbers = #tpu.dot_dimension_numbers<[1], [0], [0], [1], [0, 0, 1, 1], [], []>} : vector<6x16xf32>, vector<16x16xf32>, vector<6x16xf32> -> vector<6x16xf32>
    %cst_155 = arith.constant dense<0.000000e+00> : vector<6x16xf32>
    %135 = tpu.matmul %117, %121, %cst_155 {dimension_numbers = #tpu.dot_dimension_numbers<[1], [0], [0], [1], [0, 0, 1, 1], [], []>} : vector<6x16xf32>, vector<16x16xf32>, vector<6x16xf32> -> vector<6x16xf32>
    %cst_156 = arith.constant dense<0.000000e+00> : vector<6x16xf32>
    %136 = tpu.matmul %117, %123, %cst_156 {dimension_numbers = #tpu.dot_dimension_numbers<[1], [0], [0], [1], [0, 0, 1, 1], [], []>} : vector<6x16xf32>, vector<16x16xf32>, vector<6x16xf32> -> vector<6x16xf32>
    %cst_157 = arith.constant dense<0.000000e+00> : vector<6x16xf32>
    %137 = tpu.matmul %117, %125, %cst_157 {dimension_numbers = #tpu.dot_dimension_numbers<[1], [0], [0], [1], [0, 0, 1, 1], [], []>} : vector<6x16xf32>, vector<16x16xf32>, vector<6x16xf32> -> vector<6x16xf32>
    %cst_158 = arith.constant 0.000000e+00 : f32
    %138 = vector.broadcast %cst_158 : f32 to vector<1x16xf32>
    %cst_159 = arith.constant 0.000000e+00 : f32
    %139 = vector.broadcast %cst_159 : f32 to vector<1x16xf32>
    %140 = vector.extract_strided_slice %134 {offsets = [0, 0], sizes = [1, 16], strides = [1, 1]} : vector<6x16xf32> to vector<1x16xf32>
    %cst_160 = arith.constant dense<0.000000e+00> : vector<1x16xf32>
    %141 = tpu.matmul %138, %127, %cst_160 {dimension_numbers = #tpu.dot_dimension_numbers<[1], [0], [0], [1], [0, 0, 1, 1], [], []>} : vector<1x16xf32>, vector<16x16xf32>, vector<1x16xf32> -> vector<1x16xf32>
    %142 = arith.addf %140, %141 : vector<1x16xf32>
    %143 = arith.negf %142 : vector<1x16xf32>
    %144 = math.exp %143 : vector<1x16xf32>
    %cst_161 = arith.constant 1.000000e+00 : f32
    %145 = vector.broadcast %cst_161 : f32 to vector<1x16xf32>
    %146 = arith.addf %145, %144 : vector<1x16xf32>
    %147 = arith.divf %145, %146 : vector<1x16xf32>
    %148 = vector.extract_strided_slice %135 {offsets = [0, 0], sizes = [1, 16], strides = [1, 1]} : vector<6x16xf32> to vector<1x16xf32>
    %cst_162 = arith.constant dense<0.000000e+00> : vector<1x16xf32>
    %149 = tpu.matmul %138, %129, %cst_162 {dimension_numbers = #tpu.dot_dimension_numbers<[1], [0], [0], [1], [0, 0, 1, 1], [], []>} : vector<1x16xf32>, vector<16x16xf32>, vector<1x16xf32> -> vector<1x16xf32>
    %150 = arith.addf %148, %149 : vector<1x16xf32>
    %151 = arith.negf %150 : vector<1x16xf32>
    %152 = math.exp %151 : vector<1x16xf32>
    %cst_163 = arith.constant 1.000000e+00 : f32
    %153 = vector.broadcast %cst_163 : f32 to vector<1x16xf32>
    %154 = arith.addf %153, %152 : vector<1x16xf32>
    %155 = arith.divf %153, %154 : vector<1x16xf32>
    %156 = vector.extract_strided_slice %136 {offsets = [0, 0], sizes = [1, 16], strides = [1, 1]} : vector<6x16xf32> to vector<1x16xf32>
    %cst_164 = arith.constant dense<0.000000e+00> : vector<1x16xf32>
    %157 = tpu.matmul %138, %131, %cst_164 {dimension_numbers = #tpu.dot_dimension_numbers<[1], [0], [0], [1], [0, 0, 1, 1], [], []>} : vector<1x16xf32>, vector<16x16xf32>, vector<1x16xf32> -> vector<1x16xf32>
    %158 = arith.addf %156, %157 : vector<1x16xf32>
    %159 = math.tanh %158 : vector<1x16xf32>
    %160 = vector.extract_strided_slice %137 {offsets = [0, 0], sizes = [1, 16], strides = [1, 1]} : vector<6x16xf32> to vector<1x16xf32>
    %cst_165 = arith.constant dense<0.000000e+00> : vector<1x16xf32>
    %161 = tpu.matmul %138, %133, %cst_165 {dimension_numbers = #tpu.dot_dimension_numbers<[1], [0], [0], [1], [0, 0, 1, 1], [], []>} : vector<1x16xf32>, vector<16x16xf32>, vector<1x16xf32> -> vector<1x16xf32>
    %162 = arith.addf %160, %161 : vector<1x16xf32>
    %163 = arith.negf %162 : vector<1x16xf32>
    %164 = math.exp %163 : vector<1x16xf32>
    %cst_166 = arith.constant 1.000000e+00 : f32
    %165 = vector.broadcast %cst_166 : f32 to vector<1x16xf32>
    %166 = arith.addf %165, %164 : vector<1x16xf32>
    %167 = arith.divf %165, %166 : vector<1x16xf32>
    %168 = arith.mulf %155, %139 : vector<1x16xf32>
    %169 = arith.mulf %147, %159 : vector<1x16xf32>
    %170 = arith.addf %168, %169 : vector<1x16xf32>
    %171 = math.tanh %170 : vector<1x16xf32>
    %172 = arith.mulf %167, %171 : vector<1x16xf32>
    %173 = vector.extract_strided_slice %134 {offsets = [1, 0], sizes = [1, 16], strides = [1, 1]} : vector<6x16xf32> to vector<1x16xf32>
    %cst_167 = arith.constant dense<0.000000e+00> : vector<1x16xf32>
    %174 = tpu.matmul %172, %127, %cst_167 {dimension_numbers = #tpu.dot_dimension_numbers<[1], [0], [0], [1], [0, 0, 1, 1], [], []>} : vector<1x16xf32>, vector<16x16xf32>, vector<1x16xf32> -> vector<1x16xf32>
    %175 = arith.addf %173, %174 : vector<1x16xf32>
    %176 = arith.negf %175 : vector<1x16xf32>
    %177 = math.exp %176 : vector<1x16xf32>
    %cst_168 = arith.constant 1.000000e+00 : f32
    %178 = vector.broadcast %cst_168 : f32 to vector<1x16xf32>
    %179 = arith.addf %178, %177 : vector<1x16xf32>
    %180 = arith.divf %178, %179 : vector<1x16xf32>
    %181 = vector.extract_strided_slice %135 {offsets = [1, 0], sizes = [1, 16], strides = [1, 1]} : vector<6x16xf32> to vector<1x16xf32>
    %cst_169 = arith.constant dense<0.000000e+00> : vector<1x16xf32>
    %182 = tpu.matmul %172, %129, %cst_169 {dimension_numbers = #tpu.dot_dimension_numbers<[1], [0], [0], [1], [0, 0, 1, 1], [], []>} : vector<1x16xf32>, vector<16x16xf32>, vector<1x16xf32> -> vector<1x16xf32>
    %183 = arith.addf %181, %182 : vector<1x16xf32>
    %184 = arith.negf %183 : vector<1x16xf32>
    %185 = math.exp %184 : vector<1x16xf32>
    %cst_170 = arith.constant 1.000000e+00 : f32
    %186 = vector.broadcast %cst_170 : f32 to vector<1x16xf32>
    %187 = arith.addf %186, %185 : vector<1x16xf32>
    %188 = arith.divf %186, %187 : vector<1x16xf32>
    %189 = vector.extract_strided_slice %136 {offsets = [1, 0], sizes = [1, 16], strides = [1, 1]} : vector<6x16xf32> to vector<1x16xf32>
    %cst_171 = arith.constant dense<0.000000e+00> : vector<1x16xf32>
    %190 = tpu.matmul %172, %131, %cst_171 {dimension_numbers = #tpu.dot_dimension_numbers<[1], [0], [0], [1], [0, 0, 1, 1], [], []>} : vector<1x16xf32>, vector<16x16xf32>, vector<1x16xf32> -> vector<1x16xf32>
    %191 = arith.addf %189, %190 : vector<1x16xf32>
    %192 = math.tanh %191 : vector<1x16xf32>
    %193 = vector.extract_strided_slice %137 {offsets = [1, 0], sizes = [1, 16], strides = [1, 1]} : vector<6x16xf32> to vector<1x16xf32>
    %cst_172 = arith.constant dense<0.000000e+00> : vector<1x16xf32>
    %194 = tpu.matmul %172, %133, %cst_172 {dimension_numbers = #tpu.dot_dimension_numbers<[1], [0], [0], [1], [0, 0, 1, 1], [], []>} : vector<1x16xf32>, vector<16x16xf32>, vector<1x16xf32> -> vector<1x16xf32>
    %195 = arith.addf %193, %194 : vector<1x16xf32>
    %196 = arith.negf %195 : vector<1x16xf32>
    %197 = math.exp %196 : vector<1x16xf32>
    %cst_173 = arith.constant 1.000000e+00 : f32
    %198 = vector.broadcast %cst_173 : f32 to vector<1x16xf32>
    %199 = arith.addf %198, %197 : vector<1x16xf32>
    %200 = arith.divf %198, %199 : vector<1x16xf32>
    %201 = arith.mulf %188, %170 : vector<1x16xf32>
    %202 = arith.mulf %180, %192 : vector<1x16xf32>
    %203 = arith.addf %201, %202 : vector<1x16xf32>
    %204 = math.tanh %203 : vector<1x16xf32>
    %205 = arith.mulf %200, %204 : vector<1x16xf32>
    %206 = vector.extract_strided_slice %134 {offsets = [2, 0], sizes = [1, 16], strides = [1, 1]} : vector<6x16xf32> to vector<1x16xf32>
    %cst_174 = arith.constant dense<0.000000e+00> : vector<1x16xf32>
    %207 = tpu.matmul %205, %127, %cst_174 {dimension_numbers = #tpu.dot_dimension_numbers<[1], [0], [0], [1], [0, 0, 1, 1], [], []>} : vector<1x16xf32>, vector<16x16xf32>, vector<1x16xf32> -> vector<1x16xf32>
    %208 = arith.addf %206, %207 : vector<1x16xf32>
    %209 = arith.negf %208 : vector<1x16xf32>
    %210 = math.exp %209 : vector<1x16xf32>
    %cst_175 = arith.constant 1.000000e+00 : f32
    %211 = vector.broadcast %cst_175 : f32 to vector<1x16xf32>
    %212 = arith.addf %211, %210 : vector<1x16xf32>
    %213 = arith.divf %211, %212 : vector<1x16xf32>
    %214 = vector.extract_strided_slice %135 {offsets = [2, 0], sizes = [1, 16], strides = [1, 1]} : vector<6x16xf32> to vector<1x16xf32>
    %cst_176 = arith.constant dense<0.000000e+00> : vector<1x16xf32>
    %215 = tpu.matmul %205, %129, %cst_176 {dimension_numbers = #tpu.dot_dimension_numbers<[1], [0], [0], [1], [0, 0, 1, 1], [], []>} : vector<1x16xf32>, vector<16x16xf32>, vector<1x16xf32> -> vector<1x16xf32>
    %216 = arith.addf %214, %215 : vector<1x16xf32>
    %217 = arith.negf %216 : vector<1x16xf32>
    %218 = math.exp %217 : vector<1x16xf32>
    %cst_177 = arith.constant 1.000000e+00 : f32
    %219 = vector.broadcast %cst_177 : f32 to vector<1x16xf32>
    %220 = arith.addf %219, %218 : vector<1x16xf32>
    %221 = arith.divf %219, %220 : vector<1x16xf32>
    %222 = vector.extract_strided_slice %136 {offsets = [2, 0], sizes = [1, 16], strides = [1, 1]} : vector<6x16xf32> to vector<1x16xf32>
    %cst_178 = arith.constant dense<0.000000e+00> : vector<1x16xf32>
    %223 = tpu.matmul %205, %131, %cst_178 {dimension_numbers = #tpu.dot_dimension_numbers<[1], [0], [0], [1], [0, 0, 1, 1], [], []>} : vector<1x16xf32>, vector<16x16xf32>, vector<1x16xf32> -> vector<1x16xf32>
    %224 = arith.addf %222, %223 : vector<1x16xf32>
    %225 = math.tanh %224 : vector<1x16xf32>
    %226 = vector.extract_strided_slice %137 {offsets = [2, 0], sizes = [1, 16], strides = [1, 1]} : vector<6x16xf32> to vector<1x16xf32>
    %cst_179 = arith.constant dense<0.000000e+00> : vector<1x16xf32>
    %227 = tpu.matmul %205, %133, %cst_179 {dimension_numbers = #tpu.dot_dimension_numbers<[1], [0], [0], [1], [0, 0, 1, 1], [], []>} : vector<1x16xf32>, vector<16x16xf32>, vector<1x16xf32> -> vector<1x16xf32>
    %228 = arith.addf %226, %227 : vector<1x16xf32>
    %229 = arith.negf %228 : vector<1x16xf32>
    %230 = math.exp %229 : vector<1x16xf32>
    %cst_180 = arith.constant 1.000000e+00 : f32
    %231 = vector.broadcast %cst_180 : f32 to vector<1x16xf32>
    %232 = arith.addf %231, %230 : vector<1x16xf32>
    %233 = arith.divf %231, %232 : vector<1x16xf32>
    %234 = arith.mulf %221, %203 : vector<1x16xf32>
    %235 = arith.mulf %213, %225 : vector<1x16xf32>
    %236 = arith.addf %234, %235 : vector<1x16xf32>
    %237 = math.tanh %236 : vector<1x16xf32>
    %238 = arith.mulf %233, %237 : vector<1x16xf32>
    %239 = vector.extract_strided_slice %134 {offsets = [3, 0], sizes = [1, 16], strides = [1, 1]} : vector<6x16xf32> to vector<1x16xf32>
    %cst_181 = arith.constant dense<0.000000e+00> : vector<1x16xf32>
    %240 = tpu.matmul %238, %127, %cst_181 {dimension_numbers = #tpu.dot_dimension_numbers<[1], [0], [0], [1], [0, 0, 1, 1], [], []>} : vector<1x16xf32>, vector<16x16xf32>, vector<1x16xf32> -> vector<1x16xf32>
    %241 = arith.addf %239, %240 : vector<1x16xf32>
    %242 = arith.negf %241 : vector<1x16xf32>
    %243 = math.exp %242 : vector<1x16xf32>
    %cst_182 = arith.constant 1.000000e+00 : f32
    %244 = vector.broadcast %cst_182 : f32 to vector<1x16xf32>
    %245 = arith.addf %244, %243 : vector<1x16xf32>
    %246 = arith.divf %244, %245 : vector<1x16xf32>
    %247 = vector.extract_strided_slice %135 {offsets = [3, 0], sizes = [1, 16], strides = [1, 1]} : vector<6x16xf32> to vector<1x16xf32>
    %cst_183 = arith.constant dense<0.000000e+00> : vector<1x16xf32>
    %248 = tpu.matmul %238, %129, %cst_183 {dimension_numbers = #tpu.dot_dimension_numbers<[1], [0], [0], [1], [0, 0, 1, 1], [], []>} : vector<1x16xf32>, vector<16x16xf32>, vector<1x16xf32> -> vector<1x16xf32>
    %249 = arith.addf %247, %248 : vector<1x16xf32>
    %250 = arith.negf %249 : vector<1x16xf32>
    %251 = math.exp %250 : vector<1x16xf32>
    %cst_184 = arith.constant 1.000000e+00 : f32
    %252 = vector.broadcast %cst_184 : f32 to vector<1x16xf32>
    %253 = arith.addf %252, %251 : vector<1x16xf32>
    %254 = arith.divf %252, %253 : vector<1x16xf32>
    %255 = vector.extract_strided_slice %136 {offsets = [3, 0], sizes = [1, 16], strides = [1, 1]} : vector<6x16xf32> to vector<1x16xf32>
    %cst_185 = arith.constant dense<0.000000e+00> : vector<1x16xf32>
    %256 = tpu.matmul %238, %131, %cst_185 {dimension_numbers = #tpu.dot_dimension_numbers<[1], [0], [0], [1], [0, 0, 1, 1], [], []>} : vector<1x16xf32>, vector<16x16xf32>, vector<1x16xf32> -> vector<1x16xf32>
    %257 = arith.addf %255, %256 : vector<1x16xf32>
    %258 = math.tanh %257 : vector<1x16xf32>
    %259 = vector.extract_strided_slice %137 {offsets = [3, 0], sizes = [1, 16], strides = [1, 1]} : vector<6x16xf32> to vector<1x16xf32>
    %cst_186 = arith.constant dense<0.000000e+00> : vector<1x16xf32>
    %260 = tpu.matmul %238, %133, %cst_186 {dimension_numbers = #tpu.dot_dimension_numbers<[1], [0], [0], [1], [0, 0, 1, 1], [], []>} : vector<1x16xf32>, vector<16x16xf32>, vector<1x16xf32> -> vector<1x16xf32>
    %261 = arith.addf %259, %260 : vector<1x16xf32>
    %262 = arith.negf %261 : vector<1x16xf32>
    %263 = math.exp %262 : vector<1x16xf32>
    %cst_187 = arith.constant 1.000000e+00 : f32
    %264 = vector.broadcast %cst_187 : f32 to vector<1x16xf32>
    %265 = arith.addf %264, %263 : vector<1x16xf32>
    %266 = arith.divf %264, %265 : vector<1x16xf32>
    %267 = arith.mulf %254, %236 : vector<1x16xf32>
    %268 = arith.mulf %246, %258 : vector<1x16xf32>
    %269 = arith.addf %267, %268 : vector<1x16xf32>
    %270 = math.tanh %269 : vector<1x16xf32>
    %271 = arith.mulf %266, %270 : vector<1x16xf32>
    %272 = vector.extract_strided_slice %134 {offsets = [4, 0], sizes = [1, 16], strides = [1, 1]} : vector<6x16xf32> to vector<1x16xf32>
    %cst_188 = arith.constant dense<0.000000e+00> : vector<1x16xf32>
    %273 = tpu.matmul %271, %127, %cst_188 {dimension_numbers = #tpu.dot_dimension_numbers<[1], [0], [0], [1], [0, 0, 1, 1], [], []>} : vector<1x16xf32>, vector<16x16xf32>, vector<1x16xf32> -> vector<1x16xf32>
    %274 = arith.addf %272, %273 : vector<1x16xf32>
    %275 = arith.negf %274 : vector<1x16xf32>
    %276 = math.exp %275 : vector<1x16xf32>
    %cst_189 = arith.constant 1.000000e+00 : f32
    %277 = vector.broadcast %cst_189 : f32 to vector<1x16xf32>
    %278 = arith.addf %277, %276 : vector<1x16xf32>
    %279 = arith.divf %277, %278 : vector<1x16xf32>
    %280 = vector.extract_strided_slice %135 {offsets = [4, 0], sizes = [1, 16], strides = [1, 1]} : vector<6x16xf32> to vector<1x16xf32>
    %cst_190 = arith.constant dense<0.000000e+00> : vector<1x16xf32>
    %281 = tpu.matmul %271, %129, %cst_190 {dimension_numbers = #tpu.dot_dimension_numbers<[1], [0], [0], [1], [0, 0, 1, 1], [], []>} : vector<1x16xf32>, vector<16x16xf32>, vector<1x16xf32> -> vector<1x16xf32>
    %282 = arith.addf %280, %281 : vector<1x16xf32>
    %283 = arith.negf %282 : vector<1x16xf32>
    %284 = math.exp %283 : vector<1x16xf32>
    %cst_191 = arith.constant 1.000000e+00 : f32
    %285 = vector.broadcast %cst_191 : f32 to vector<1x16xf32>
    %286 = arith.addf %285, %284 : vector<1x16xf32>
    %287 = arith.divf %285, %286 : vector<1x16xf32>
    %288 = vector.extract_strided_slice %136 {offsets = [4, 0], sizes = [1, 16], strides = [1, 1]} : vector<6x16xf32> to vector<1x16xf32>
    %cst_192 = arith.constant dense<0.000000e+00> : vector<1x16xf32>
    %289 = tpu.matmul %271, %131, %cst_192 {dimension_numbers = #tpu.dot_dimension_numbers<[1], [0], [0], [1], [0, 0, 1, 1], [], []>} : vector<1x16xf32>, vector<16x16xf32>, vector<1x16xf32> -> vector<1x16xf32>
    %290 = arith.addf %288, %289 : vector<1x16xf32>
    %291 = math.tanh %290 : vector<1x16xf32>
    %292 = vector.extract_strided_slice %137 {offsets = [4, 0], sizes = [1, 16], strides = [1, 1]} : vector<6x16xf32> to vector<1x16xf32>
    %cst_193 = arith.constant dense<0.000000e+00> : vector<1x16xf32>
    %293 = tpu.matmul %271, %133, %cst_193 {dimension_numbers = #tpu.dot_dimension_numbers<[1], [0], [0], [1], [0, 0, 1, 1], [], []>} : vector<1x16xf32>, vector<16x16xf32>, vector<1x16xf32> -> vector<1x16xf32>
    %294 = arith.addf %292, %293 : vector<1x16xf32>
    %295 = arith.negf %294 : vector<1x16xf32>
    %296 = math.exp %295 : vector<1x16xf32>
    %cst_194 = arith.constant 1.000000e+00 : f32
    %297 = vector.broadcast %cst_194 : f32 to vector<1x16xf32>
    %298 = arith.addf %297, %296 : vector<1x16xf32>
    %299 = arith.divf %297, %298 : vector<1x16xf32>
    %300 = arith.mulf %287, %269 : vector<1x16xf32>
    %301 = arith.mulf %279, %291 : vector<1x16xf32>
    %302 = arith.addf %300, %301 : vector<1x16xf32>
    %303 = math.tanh %302 : vector<1x16xf32>
    %304 = arith.mulf %299, %303 : vector<1x16xf32>
    %305 = vector.extract_strided_slice %134 {offsets = [5, 0], sizes = [1, 16], strides = [1, 1]} : vector<6x16xf32> to vector<1x16xf32>
    %cst_195 = arith.constant dense<0.000000e+00> : vector<1x16xf32>
    %306 = tpu.matmul %304, %127, %cst_195 {dimension_numbers = #tpu.dot_dimension_numbers<[1], [0], [0], [1], [0, 0, 1, 1], [], []>} : vector<1x16xf32>, vector<16x16xf32>, vector<1x16xf32> -> vector<1x16xf32>
    %307 = arith.addf %305, %306 : vector<1x16xf32>
    %308 = arith.negf %307 : vector<1x16xf32>
    %309 = math.exp %308 : vector<1x16xf32>
    %cst_196 = arith.constant 1.000000e+00 : f32
    %310 = vector.broadcast %cst_196 : f32 to vector<1x16xf32>
    %311 = arith.addf %310, %309 : vector<1x16xf32>
    %312 = arith.divf %310, %311 : vector<1x16xf32>
    %313 = vector.extract_strided_slice %135 {offsets = [5, 0], sizes = [1, 16], strides = [1, 1]} : vector<6x16xf32> to vector<1x16xf32>
    %cst_197 = arith.constant dense<0.000000e+00> : vector<1x16xf32>
    %314 = tpu.matmul %304, %129, %cst_197 {dimension_numbers = #tpu.dot_dimension_numbers<[1], [0], [0], [1], [0, 0, 1, 1], [], []>} : vector<1x16xf32>, vector<16x16xf32>, vector<1x16xf32> -> vector<1x16xf32>
    %315 = arith.addf %313, %314 : vector<1x16xf32>
    %316 = arith.negf %315 : vector<1x16xf32>
    %317 = math.exp %316 : vector<1x16xf32>
    %cst_198 = arith.constant 1.000000e+00 : f32
    %318 = vector.broadcast %cst_198 : f32 to vector<1x16xf32>
    %319 = arith.addf %318, %317 : vector<1x16xf32>
    %320 = arith.divf %318, %319 : vector<1x16xf32>
    %321 = vector.extract_strided_slice %136 {offsets = [5, 0], sizes = [1, 16], strides = [1, 1]} : vector<6x16xf32> to vector<1x16xf32>
    %cst_199 = arith.constant dense<0.000000e+00> : vector<1x16xf32>
    %322 = tpu.matmul %304, %131, %cst_199 {dimension_numbers = #tpu.dot_dimension_numbers<[1], [0], [0], [1], [0, 0, 1, 1], [], []>} : vector<1x16xf32>, vector<16x16xf32>, vector<1x16xf32> -> vector<1x16xf32>
    %323 = arith.addf %321, %322 : vector<1x16xf32>
    %324 = math.tanh %323 : vector<1x16xf32>
    %325 = vector.extract_strided_slice %137 {offsets = [5, 0], sizes = [1, 16], strides = [1, 1]} : vector<6x16xf32> to vector<1x16xf32>
    %cst_200 = arith.constant dense<0.000000e+00> : vector<1x16xf32>
    %326 = tpu.matmul %304, %133, %cst_200 {dimension_numbers = #tpu.dot_dimension_numbers<[1], [0], [0], [1], [0, 0, 1, 1], [], []>} : vector<1x16xf32>, vector<16x16xf32>, vector<1x16xf32> -> vector<1x16xf32>
    %327 = arith.addf %325, %326 : vector<1x16xf32>
    %328 = arith.negf %327 : vector<1x16xf32>
    %329 = math.exp %328 : vector<1x16xf32>
    %cst_201 = arith.constant 1.000000e+00 : f32
    %330 = vector.broadcast %cst_201 : f32 to vector<1x16xf32>
    %331 = arith.addf %330, %329 : vector<1x16xf32>
    %332 = arith.divf %330, %331 : vector<1x16xf32>
    %333 = arith.mulf %320, %302 : vector<1x16xf32>
    %334 = arith.mulf %312, %324 : vector<1x16xf32>
    %335 = arith.addf %333, %334 : vector<1x16xf32>
    %336 = math.tanh %335 : vector<1x16xf32>
    %337 = arith.mulf %332, %336 : vector<1x16xf32>
    %cst_202 = arith.constant 0.000000e+00 : f32
    %338 = vector.broadcast %cst_202 : f32 to vector<1x48xf32>
    %c0_203 = arith.constant 0 : index
    %c0_204 = arith.constant 0 : index
    %c0_205 = arith.constant 0 : index
    %339 = vector.load %arg10[%c0_203, %c0_204, %c0_205] : memref<6x16x48xf32, #tpu.memory_space<vmem>>, vector<1x16x48xf32>
    %340 = vector.shape_cast %339 : vector<1x16x48xf32> to vector<16x48xf32>
    %cst_206 = arith.constant dense<0.000000e+00> : vector<1x48xf32>
    %341 = tpu.matmul %172, %340, %cst_206 {dimension_numbers = #tpu.dot_dimension_numbers<[1], [0], [0], [1], [0, 0, 1, 1], [], []>} : vector<1x16xf32>, vector<16x48xf32>, vector<1x48xf32> -> vector<1x48xf32>
    %342 = arith.addf %338, %341 : vector<1x48xf32>
    %c1_207 = arith.constant 1 : index
    %c0_208 = arith.constant 0 : index
    %c0_209 = arith.constant 0 : index
    %343 = vector.load %arg10[%c1_207, %c0_208, %c0_209] : memref<6x16x48xf32, #tpu.memory_space<vmem>>, vector<1x16x48xf32>
    %344 = vector.shape_cast %343 : vector<1x16x48xf32> to vector<16x48xf32>
    %cst_210 = arith.constant dense<0.000000e+00> : vector<1x48xf32>
    %345 = tpu.matmul %205, %344, %cst_210 {dimension_numbers = #tpu.dot_dimension_numbers<[1], [0], [0], [1], [0, 0, 1, 1], [], []>} : vector<1x16xf32>, vector<16x48xf32>, vector<1x48xf32> -> vector<1x48xf32>
    %346 = arith.addf %342, %345 : vector<1x48xf32>
    %c2_211 = arith.constant 2 : index
    %c0_212 = arith.constant 0 : index
    %c0_213 = arith.constant 0 : index
    %347 = vector.load %arg10[%c2_211, %c0_212, %c0_213] : memref<6x16x48xf32, #tpu.memory_space<vmem>>, vector<1x16x48xf32>
    %348 = vector.shape_cast %347 : vector<1x16x48xf32> to vector<16x48xf32>
    %cst_214 = arith.constant dense<0.000000e+00> : vector<1x48xf32>
    %349 = tpu.matmul %238, %348, %cst_214 {dimension_numbers = #tpu.dot_dimension_numbers<[1], [0], [0], [1], [0, 0, 1, 1], [], []>} : vector<1x16xf32>, vector<16x48xf32>, vector<1x48xf32> -> vector<1x48xf32>
    %350 = arith.addf %346, %349 : vector<1x48xf32>
    %c3_215 = arith.constant 3 : index
    %c0_216 = arith.constant 0 : index
    %c0_217 = arith.constant 0 : index
    %351 = vector.load %arg10[%c3_215, %c0_216, %c0_217] : memref<6x16x48xf32, #tpu.memory_space<vmem>>, vector<1x16x48xf32>
    %352 = vector.shape_cast %351 : vector<1x16x48xf32> to vector<16x48xf32>
    %cst_218 = arith.constant dense<0.000000e+00> : vector<1x48xf32>
    %353 = tpu.matmul %271, %352, %cst_218 {dimension_numbers = #tpu.dot_dimension_numbers<[1], [0], [0], [1], [0, 0, 1, 1], [], []>} : vector<1x16xf32>, vector<16x48xf32>, vector<1x48xf32> -> vector<1x48xf32>
    %354 = arith.addf %350, %353 : vector<1x48xf32>
    %c4_219 = arith.constant 4 : index
    %c0_220 = arith.constant 0 : index
    %c0_221 = arith.constant 0 : index
    %355 = vector.load %arg10[%c4_219, %c0_220, %c0_221] : memref<6x16x48xf32, #tpu.memory_space<vmem>>, vector<1x16x48xf32>
    %356 = vector.shape_cast %355 : vector<1x16x48xf32> to vector<16x48xf32>
    %cst_222 = arith.constant dense<0.000000e+00> : vector<1x48xf32>
    %357 = tpu.matmul %304, %356, %cst_222 {dimension_numbers = #tpu.dot_dimension_numbers<[1], [0], [0], [1], [0, 0, 1, 1], [], []>} : vector<1x16xf32>, vector<16x48xf32>, vector<1x48xf32> -> vector<1x48xf32>
    %358 = arith.addf %354, %357 : vector<1x48xf32>
    %c5_223 = arith.constant 5 : index
    %c0_224 = arith.constant 0 : index
    %c0_225 = arith.constant 0 : index
    %359 = vector.load %arg10[%c5_223, %c0_224, %c0_225] : memref<6x16x48xf32, #tpu.memory_space<vmem>>, vector<1x16x48xf32>
    %360 = vector.shape_cast %359 : vector<1x16x48xf32> to vector<16x48xf32>
    %cst_226 = arith.constant dense<0.000000e+00> : vector<1x48xf32>
    %361 = tpu.matmul %337, %360, %cst_226 {dimension_numbers = #tpu.dot_dimension_numbers<[1], [0], [0], [1], [0, 0, 1, 1], [], []>} : vector<1x16xf32>, vector<16x48xf32>, vector<1x48xf32> -> vector<1x48xf32>
    %362 = arith.addf %358, %361 : vector<1x48xf32>
    %c0_227 = arith.constant 0 : index
    %c0_228 = arith.constant 0 : index
    %363 = vector.load %arg11[%c0_227, %c0_228] : memref<1x48xf32, #tpu.memory_space<vmem>>, vector<1x48xf32>
    %364 = arith.mulf %362, %363 : vector<1x48xf32>
    %c0_229 = arith.constant 0 : index
    %c0_230 = arith.constant 0 : index
    %365 = vector.load %arg12[%c0_229, %c0_230] : memref<1x48xf32, #tpu.memory_space<vmem>>, vector<1x48xf32>
    %366 = arith.addf %364, %365 : vector<1x48xf32>
    %cst_231 = arith.constant 0.000000e+00 : f32
    %367 = vector.broadcast %cst_231 : f32 to vector<1x48xf32>
    %368 = arith.maximumf %366, %367 : vector<1x48xf32>
    %c0_232 = arith.constant 0 : index
    %c0_233 = arith.constant 0 : index
    %369 = vector.load %arg13[%c0_232, %c0_233] : memref<48x8xf32, #tpu.memory_space<vmem>>, vector<48x8xf32>
    %cst_234 = arith.constant dense<0.000000e+00> : vector<1x8xf32>
    %370 = tpu.matmul %368, %369, %cst_234 {dimension_numbers = #tpu.dot_dimension_numbers<[1], [0], [0], [1], [0, 0, 1, 1], [], []>} : vector<1x48xf32>, vector<48x8xf32>, vector<1x8xf32> -> vector<1x8xf32>
    %c0_235 = arith.constant 0 : index
    %c0_236 = arith.constant 0 : index
    %371 = vector.load %arg14[%c0_235, %c0_236] : memref<1x8xf32, #tpu.memory_space<vmem>>, vector<1x8xf32>
    %372 = arith.addf %370, %371 : vector<1x8xf32>
    %c0_237 = arith.constant 0 : index
    %c0_238 = arith.constant 0 : index
    %c0_239 = arith.constant 0 : index
    %373 = vector.load %arg15[%c0_237, %c0_238, %c0_239] : memref<1x1x8xf32, #tpu.memory_space<vmem>>, vector<1x1x8xf32>
    %374 = vector.shape_cast %373 : vector<1x1x8xf32> to vector<1x8xf32>
    %375 = vector.shape_cast %372 : vector<1x8xf32> to vector<1x1x8xf32>
    tpu.vector_store %arg15[%c0_237, %c0_238, %c0_239], %375 {strides = array<i32>} : memref<1x1x8xf32, #tpu.memory_space<vmem>>, vector<1x1x8xf32>,
    return
  }
  func.func @transform_0(%arg0: i32) -> (i32, i32, i32) {
    %c0_i32 = arith.constant 0 : i32
    %c0_i32_0 = arith.constant 0 : i32
    %c0_i32_1 = arith.constant 0 : i32
    return %arg0, %c0_i32, %c0_i32_0 : i32, i32, i32
  }
  func.func @transform_1(%arg0: i32) -> (i32, i32, i32) {
    %c0_i32 = arith.constant 0 : i32
    %c0_i32_0 = arith.constant 0 : i32
    %c0_i32_1 = arith.constant 0 : i32
    %c0_i32_2 = arith.constant 0 : i32
    return %c0_i32, %c0_i32_0, %c0_i32_1 : i32, i32, i32
  }
  func.func @transform_2(%arg0: i32) -> (i32, i32) {
    %c0_i32 = arith.constant 0 : i32
    %c0_i32_0 = arith.constant 0 : i32
    %c0_i32_1 = arith.constant 0 : i32
    return %c0_i32, %c0_i32_0 : i32, i32
  }
  func.func @transform_3(%arg0: i32) -> (i32, i32) {
    %c0_i32 = arith.constant 0 : i32
    %c0_i32_0 = arith.constant 0 : i32
    %c0_i32_1 = arith.constant 0 : i32
    return %c0_i32, %c0_i32_0 : i32, i32
  }
  func.func @transform_4(%arg0: i32) -> (i32, i32, i32) {
    %c0_i32 = arith.constant 0 : i32
    %c0_i32_0 = arith.constant 0 : i32
    %c0_i32_1 = arith.constant 0 : i32
    %c0_i32_2 = arith.constant 0 : i32
    return %c0_i32, %c0_i32_0, %c0_i32_1 : i32, i32, i32
  }
  func.func @transform_5(%arg0: i32) -> (i32, i32) {
    %c0_i32 = arith.constant 0 : i32
    %c0_i32_0 = arith.constant 0 : i32
    %c0_i32_1 = arith.constant 0 : i32
    return %c0_i32, %c0_i32_0 : i32, i32
  }
  func.func @transform_6(%arg0: i32) -> (i32, i32) {
    %c0_i32 = arith.constant 0 : i32
    %c0_i32_0 = arith.constant 0 : i32
    %c0_i32_1 = arith.constant 0 : i32
    return %c0_i32, %c0_i32_0 : i32, i32
  }
  func.func @transform_7(%arg0: i32) -> (i32, i32, i32) {
    %c0_i32 = arith.constant 0 : i32
    %c0_i32_0 = arith.constant 0 : i32
    %c0_i32_1 = arith.constant 0 : i32
    %c0_i32_2 = arith.constant 0 : i32
    return %c0_i32, %c0_i32_0, %c0_i32_1 : i32, i32, i32
  }
  func.func @transform_8(%arg0: i32) -> (i32, i32, i32) {
    %c0_i32 = arith.constant 0 : i32
    %c0_i32_0 = arith.constant 0 : i32
    %c0_i32_1 = arith.constant 0 : i32
    %c0_i32_2 = arith.constant 0 : i32
    return %c0_i32, %c0_i32_0, %c0_i32_1 : i32, i32, i32
  }
  func.func @transform_9(%arg0: i32) -> (i32, i32, i32) {
    %c0_i32 = arith.constant 0 : i32
    %c0_i32_0 = arith.constant 0 : i32
    %c0_i32_1 = arith.constant 0 : i32
    %c0_i32_2 = arith.constant 0 : i32
    return %c0_i32, %c0_i32_0, %c0_i32_1 : i32, i32, i32
  }
  func.func @transform_10(%arg0: i32) -> (i32, i32) {
    %c0_i32 = arith.constant 0 : i32
    %c0_i32_0 = arith.constant 0 : i32
    %c0_i32_1 = arith.constant 0 : i32
    return %c0_i32, %c0_i32_0 : i32, i32
  }
  func.func @transform_11(%arg0: i32) -> (i32, i32) {
    %c0_i32 = arith.constant 0 : i32
    %c0_i32_0 = arith.constant 0 : i32
    %c0_i32_1 = arith.constant 0 : i32
    return %c0_i32, %c0_i32_0 : i32, i32
  }
  func.func @transform_12(%arg0: i32) -> (i32, i32) {
    %c0_i32 = arith.constant 0 : i32
    %c0_i32_0 = arith.constant 0 : i32
    %c0_i32_1 = arith.constant 0 : i32
    return %c0_i32, %c0_i32_0 : i32, i32
  }
  func.func @transform_13(%arg0: i32) -> (i32, i32) {
    %c0_i32 = arith.constant 0 : i32
    %c0_i32_0 = arith.constant 0 : i32
    %c0_i32_1 = arith.constant 0 : i32
    return %c0_i32, %c0_i32_0 : i32, i32
  }
  func.func @transform_14(%arg0: i32) -> (i32, i32, i32) {
    %c0_i32 = arith.constant 0 : i32
    %c0_i32_0 = arith.constant 0 : i32
    %c0_i32_1 = arith.constant 0 : i32
    return %arg0, %c0_i32, %c0_i32_0 : i32, i32, i32
  }
}

</mosaic_0001>

<bundles_post_ra>
// kernel: _lambda_.1
= control target key start
LH: loop header
LB: loop body
LE: loop exit
PB: predicated region body
PF: predicated region fallthrough
CT: control target
= control target key end

     0   :  { %s3733_s0 = inlined_call_operand.vmem [shape: f32[2,16,4], index: 0, kind: input, shape index: {}]   ;;  %s3734_s1 = inlined_call_operand.hbm [shape: f32[8,4,32], index: 1, kind: input, shape index: {}]   ;;  %s3735_s2 = inlined_call_operand.vmem [shape: f32[1,32], index: 2, kind: input, shape index: {}]   ;;  %s3736_s3 = inlined_call_operand.vmem [shape: f32[1,32], index: 3, kind: input, shape index: {}]   ;;  %s3737_s4 = inlined_call_operand.hbm [shape: f32[8,32,16], index: 4, kind: input, shape index: {}]   ;;  %s3738_s5 = inlined_call_operand.vmem [shape: f32[1,16], index: 5, kind: input, shape index: {}]   ;;  %s3739_s6 = inlined_call_operand.vmem [shape: f32[1,16], index: 6, kind: input, shape index: {}]   ;;  %s3740_s7 = inlined_call_operand.hbm [shape: f32[4,16,16], index: 7, kind: input, shape index: {}]   ;;  %s3741_s8 = inlined_call_operand.hbm [shape: f32[4,16,16], index: 8, kind: input, shape index: {}]   ;;  %s3742_s9 = inlined_call_operand.hbm [shape: f32[6,16,48], index: 9, kind: input, shape index: {}]   ;;  %s3743_s10 = inlined_call_operand.vmem [shape: f32[1,48], index: 10, kind: input, shape index: {}]   ;;  %s3744_s11 = inlined_call_operand.vmem [shape: f32[1,48], index: 11, kind: input, shape index: {}]   ;;  %s3745_s12 = inlined_call_operand.vmem [shape: f32[48,8], index: 12, kind: input, shape index: {}]   ;;  %s3746_s13 = inlined_call_operand.vmem [shape: f32[1,8], index: 13, kind: input, shape index: {}]   ;;  %s3747_s14 = inlined_call_operand.hbm [shape: f32[2,1,8], index: 14, kind: output, shape index: {}]  }
   0x1   :  { %3757 = sst [smem:[#allocation27_spill]] %s3734_s1 }
   0x2   :  { %3758 = sst [smem:[#allocation28_spill]] %s3737_s4 }
   0x3   :  { %3759 = sst [smem:[#allocation29_spill]] %s3741_s8 }
   0x4   :  { %3760 = sst [smem:[#allocation30_spill]] %s3746_s13 }
   0x5   :  { %3761 = sst [smem:[#allocation31_spill]] %s3747_s14 }
   0x6   :  { %19 = vsyncpa [#allocation7], 0 }
   0x7   :  { %20 = vsyncpa [#allocation10], 0 }
   0x8   :  { %21 = vsyncpa [#allocation13], 0 }
   0x9   :  { %22 = vsyncpa [#allocation8], 0 }
   0xa   :  { %24 = vsyncpa [#allocation8 + $0x1], 0  ;;  %s3293_s29 = smov 0   ;;  %s3295_s30 = smov 0  }
   0xb   :  { %s3297_s15 = smov 0   ;;  %s3299_s16 = smov 0  }
   0xc LB: > { %3762 = sst [smem:[#allocation20_spill]] %s3194_s29  ;;  %s3314_s17 = sadd.s32 4294967295, %s3206_s16   ;;  %s3206_s16 = sphi %s3299_s16, %s3782_s16   ;;  %s3202_s15 = sphi %s3297_s15, %s3784_s15   ;;  %s3198_s30 = sphi %s3295_s30, %s3786_s30   ;;  %s3194_s29 = sphi %s3293_s29, %s3785_s29  }
   0xd   : > { %3763 = sst [smem:[#allocation21_spill]] %s3202_s15  ;;  %s2667_s18 = sadd.s32 4294967294, %s3206_s16  }
   0xe   : > { %3764 = sst [smem:[#allocation22_spill]] %s3206_s16  ;;  %s3318_s19 = sadd.s32 1, %s3206_s16  }
   0xf   : > { %3765 = sst [smem:[#allocation23_spill]] %s3318_s19  ;;  %s336_s20 = sadd.s32 1, %s3202_s15 }
  0x10   : > { %s333_s21 = ssub.s32 %s3206_s16, %s3318_s19  ;;  %p346_p0 = scmp.ne.s32.totalorder %s3202_s15, %s3198_s30 }
  0x11   : > { %p334_p1 = scmp.eq.s32.totalorder %s333_s21, 0  ;;  %p347_p2 = scmp.eq.s32.totalorder %s3314_s17, 1 }
  0x12   : > { %p352_p3 = scmp.ne.s32.totalorder %s3198_s30, %s3194_s29  ;;  %p353_p4 = scmp.eq.s32.totalorder %s2667_s18, 1 }
  0x13   : > { %s3329_s22 = scalar_select %p334_p1, %s3202_s15, %s336_s20  }
  0x14   : > { %p3331_p5 = por %p347_p2, %p346_p0  ;;  %p3335_p6 = por %p353_p4, %p352_p3 }
  0x15   : > { %3766 = sst [smem:[#allocation24_spill]] %s3329_s22  ;;  %p2668_p7 = scmp.ge.s32.totalorder %s3206_s16, 1 }
  0x16   : > { %s3767_s23 = scalar_select %p3331_p5, 1, 0 }
  0x17   : > { %s3769_s24 = scalar_select %p3335_p6, 1, 0 }
  0x18   : > { %3768 = sst [smem:[#allocation25_spill]] %s3767_s23  ;;  %p360_p8 = scmp.lt.s32.totalorder %s3206_s16, 3 }
  0x19   : > { %3770 = sst [smem:[#allocation26_spill]] %s3769_s24  ;;  %p2829_p9 = scmp.eq.s32.totalorder %s3314_s17, 0 }
  0x1a   : > { %p3342_p10 = pnand %p2668_p7, %p360_p8  ;;  %s3772_s4 = sld [smem:[#allocation28_spill]] }
  0x1b   : > { %s3208_s18 = smov [#allocation9]   ;;  %s3774_s8 = sld [smem:[#allocation29_spill]] }
  0x1c   : > { %p2809_p11 = pneg %p3342_p10  ;;  %s393_s20 = sshll.u32 %s3208_s18, 4  ;;  %s394_s20 = int_to_ptr.vmem [resolvable:$true] %s393_s20 }
  0x1d   : > { %s3209_s26 = smov 128   ;;  %s3210_s27 = smov 8  }
  0x1e   : > { %p3353_p12 = pnand %p2829_p9, %p2809_p11  ;;  %s3775_s1 = sld [smem:[#allocation27_spill]] }
  0x1f   : > { %s3212_s15 = smov [#allocation6]   ;;  %s411_s13 = sshll.u32 %s3740_s7, 4  ;;  %s412_s13 = int_to_ptr.hbm [resolvable:$true] %s411_s13 }
  0x20   : > { %s391_s28 = sshll.u32 %s3772_s4, 4  ;;  %s3211_s4 = smov [#allocation12]   ;;  %s392_s28 = int_to_ptr.hbm [resolvable:$true] %s391_s28 }
  0x21   : > { %s425_s19 = sshll.u32 %s3774_s8, 4  ;;  %s427_s18 = sshll.u32 %s3211_s4, 4  ;;  %s426_s19 = int_to_ptr.hbm [resolvable:$true] %s425_s19  ;;  %s428_s18 = int_to_ptr.vmem [resolvable:$true] %s427_s18 }
  0x22   : > { %2815 = dma.hbm_to_vmem [thread:$0]  (!%p3353_p12), %s392_s28, 4096, %s394_s20, [#allocation10], %s3209_s26, %s3209_s26, %s3210_s27  }
  0x23   : > { %2821 = dma.hbm_to_vmem [thread:$0]  (!%p3353_p12), %s426_s19, 1024, %s428_s18, [#allocation13], %s3209_s26, %s3209_s26, %s3210_s27  }
  0x24   : > { %s371_s16 = sshll.u32 %s3775_s1, 4  ;;  %s373_s22 = sshll.u32 %s3212_s15, 4  ;;  %s372_s16 = int_to_ptr.hbm [resolvable:$true] %s371_s16  ;;  %s374_s22 = int_to_ptr.vmem [resolvable:$true] %s373_s22 }
  0x25   : > { %s3213_s28 = smov 64   ;;  %s3214_s20 = smov 4  }
  0x26   : > { %2812 = dma.hbm_to_vmem [thread:$0]  (!%p3353_p12), %s372_s16, 512, %s374_s22, [#allocation7], %s3213_s28, %s3213_s28, %s3214_s20  }
  0x27   : > { %s3215_s4 = smov [#allocation11]   ;;  %s439_s14 = sshll.u32 %s3742_s9, 4  ;;  %s440_s14 = int_to_ptr.hbm [resolvable:$true] %s439_s14 }
  0x28   : > { %s413_s29 = sshll.u32 %s3215_s4, 4  ;;  %s3216_s19 = smov [#allocation14]   ;;  %s414_s29 = int_to_ptr.vmem [resolvable:$true] %s413_s29 }
  0x29   : > { %2818 = dma.hbm_to_vmem [thread:$0]  (!%p3353_p12), %s412_s13, 1024, %s414_s29, [#allocation10], %s3209_s26, %s3209_s26, %s3210_s27  }
  0x2a   : > { %s441_s18 = sshll.u32 %s3216_s19, 4  ;;  %477 = sbr.rel (%p3342_p10) target bundleno = 1761 (0x6e1), region = 76  ;;  %s442_s18 = int_to_ptr.vmem [resolvable:$true] %s441_s18 }
  0x2b   : > { %2824 = dma.hbm_to_vmem [thread:$0]  (!%p3353_p12), %s440_s14, 1536, %s442_s18, [#allocation13], %s3209_s26, %s3209_s26, %s3210_s27  }
  0x2f   : > { %3177 = dma.done.wait (%p2829_p9), [#allocation7], 512  }
  0x30   : > { %3179 = vsyncadd (%p2829_p9), [#allocation7], 4294966784 }
  0x31   : > { %3181 = dma.done.wait (%p2829_p9), [#allocation10], 5120  }
  0x32   : > { %3183 = vsyncadd (%p2829_p9), [#allocation10], 4294962176 }
  0x33   : > { %3185 = dma.done.wait (%p2829_p9), [#allocation13], 2560  }
  0x34   : > { %3187 = vsyncadd (%p2829_p9), [#allocation13], 4294964736  ;;  %p543_p13 = scmp.lt.s32.totalorder %s3314_s17, 1  ;;  %vm548_vm0 = vcmask 31744   ;;  %v3217_v0 = vmov 0.0   ;;  %vm574_vm1 = vcmask 1043456  }
  0x35   : > { %549 = vst.msk [vmem:[#allocation2] sm:$0xff] %vm548_vm0, %v3217_v0  ;;  %v564_v1 = vld [vmem:[#allocation6 + $0x4] sm:$0xf]  ;;  %v646_v2 = vld [vmem:[#allocation6 + $0x8] sm:$0xf]  ;;  %vm935_vm2 = vcmask 261120  }
  0x36   : > { %s544_s1 = scalar_select %p543_p13, %s3314_s17, 1  ;;  %550 = vst.msk [vmem:[#allocation2 + $0x8] sm:$0xff] %vm548_vm0, %v3217_v0  ;;  %2683 = vmatpush.msk.msra.mxu0 %vm574_vm1, %v564_v1  ;;  %2691 = vmatpush.msk.msra.mxu2 %vm574_vm1, %v646_v2  ;;  %v830_v4 = vld [vmem:[#allocation6 + $0x18] sm:$0xf]  ;;  %v559_v5 = vld [vmem:[#allocation6] sm:$0xf] }
  0x37   : > { %551 = vst.msk [vmem:[#allocation2 + $0x10] sm:$0xff] %vm548_vm0, %v3217_v0  ;;  %2687 = vmatpush.msk.msra.mxu1 %vm574_vm1, %v559_v5  ;;  %v692_v7 = vld [vmem:[#allocation6 + $0xc] sm:$0xf]  ;;  %v738_v8 = vld [vmem:[#allocation6 + $0x10] sm:$0xf]  ;;  %v1035_v43 = vld [vmem:[#allocation9 + $0x58] sm:$0xff] }
  0x38   : > { %s2782_s8 = sshll.u32 %s544_s1, 4  ;;  %2707 = vmatpush.msk.msrb.mxu2 %vm574_vm1, %v830_v4  ;;  %v876_v9 = vld [vmem:[#allocation6 + $0x1c] sm:$0xf]  ;;  %2695 = vmatpush.msk.msra.mxu3 %vm574_vm1, %v692_v7  ;;  %v784_v10 = vld [vmem:[#allocation6 + $0x14] sm:$0xf]  ;;  %936 = vst.msk [vmem:[#allocation3] sm:$0xff] %vm935_vm2, %v3217_v0 }
  0x39   : > { %s547_s16 = scalar_lea.vmem %s3733_s0, %s2782_s8  ;;  %2699 = vmatpush.msk.msrb.mxu0 %vm574_vm1, %v738_v8  ;;  %2703 = vmatpush.msk.msrb.mxu1 %vm574_vm1, %v784_v10  ;;  %937 = vst.msk [vmem:[#allocation3 + $0x8] sm:$0xff] %vm935_vm2, %v3217_v0  ;;  %vm938_vm3 = vcmask 254976   ;;  %vm942_vm4 = vcmask 253952   ;;  %v970_v56 = vld [vmem:[#allocation9 + $0x38] sm:$0xff]  ;;  %v1034_v59 = vld [vmem:[#allocation9 + $0x50] sm:$0xff]  ;;  %v1033_v4 = vld [vmem:[#allocation9 + $0x48] sm:$0xff] }
  0x3a   : > { %v552_v3 = vld [vmem:[%s547_s16] sm:$0xff]  ;;  %v553_v6 = vld [vmem:[%s547_s16 + $0x8] sm:$0xff]  ;;  %2711 = vmatpush.msk.msrb.mxu3 %vm574_vm1, %v876_v9  ;;  %953 = vst.msk [vmem:[#allocation4] sm:$0xff] %vm935_vm2, %v3217_v0  ;;  %v963_v57 = vld [vmem:[#allocation9 + $0x18] sm:$0xff]  ;;  %vm1271_vm5 = vcmask 130048   ;;  %vm1273_vm6 = vcmask 125952  }
  0x3b   : > { %554 = vst.msk [vmem:[#allocation2 + $0x4] sm:$0xff] %vm548_vm0, %v552_v3  ;;  %v969_v60 = vld [vmem:[#allocation9 + $0x30] sm:$0xff]  ;;  %v3452_v63 = vld [vmem:[%s3735_s2] ss:$0 sm:$0xff]  ;;  %vm1276_vm7 = vcmask 123904   ;;  %s541_s15 = sand.u32 1, %s3198_s30  }
  0x3c   : > { %555 = vst.msk [vmem:[#allocation2 + $0xc] sm:$0xff] %vm548_vm0, %v553_v6  ;;  %v962_v61 = vld [vmem:[#allocation9 + $0x10] sm:$0xff]  ;;  %v968_v5 = vld [vmem:[#allocation9 + $0x28] sm:$0xff]  ;;  %s3776_s20 = sld [smem:[#allocation31_spill]]  ;;  %s542_s1 = scalar_lea.vmem [#allocation15], %s541_s15 }
  0x3d   : > { %954 = vst.msk [vmem:[#allocation4 + $0x8] sm:$0xff] %vm935_vm2, %v3217_v0  ;;  %v961_v6 = vld [vmem:[#allocation9 + $0x8] sm:$0xff]  ;;  %s3777_s19 = sld [smem:[#allocation30_spill]]  ;;  %s2560_s8 = sshll.u32 %s542_s1, 4  ;;  %s2561_s8 = int_to_ptr.vmem [resolvable:$true] %s2560_s8 }
  0x3e   : > { %v736_v31 = vld [vmem:[#allocation2 + $0x14] sm:$0x1]  ;;  %v828_v32 = vld [vmem:[#allocation2 + $0x16] sm:$0x1]  ;;  %v782_v33 = vld [vmem:[#allocation2 + $0x15] sm:$0x1] }
  0x3f   : > { %v874_v34 = vld [vmem:[#allocation2 + $0x17] sm:$0x1]  ;;  %939 = vst.msk [vmem:[#allocation3 + $0x10] sm:$0x3] %vm938_vm3, %v3217_v0  ;;  %v3457_v8 = vld [vmem:[%s3736_s3] ss:$0 sm:$0xff] }
  0x40   : > { %955 = vst.msk [vmem:[#allocation4 + $0x10] sm:$0x1] %vm942_vm4, %v3217_v0  ;;  %s2550_s14 = scalar_lea.sflag [#allocation8], %s541_s15 }
  0x41   : > { %1272 = vst.msk [vmem:[#allocation5] sm:$0xff] %vm1271_vm5, %v3217_v0 }
  0x42   : > { %v560_v11 = vld [vmem:[#allocation2 + $0x1] sm:$0xff]  ;;  %1274 = vst.msk [vmem:[#allocation5 + $0x8] sm:$0xf] %vm1273_vm6, %v3217_v0  ;;  %s2558_s4 = scalar_lea.hbm %s3776_s20, %s3314_s17  ;;  %s3152_s21 = scalar_lea.hbm %s3776_s20, 2 }
  0x43   : > { %v642_v12 = vld [vmem:[#allocation2 + $0x2] sm:$0xff]  ;;  %2684 = vmatmul.msk.f32.vlgmr.msra.gmra.mxu0 %vm548_vm0, %v560_v11  ;;  %v643_v16 = vld [vmem:[#allocation2 + $0xa] sm:$0xff]  ;;  %v644_v20 = vld [vmem:[#allocation2 + $0x12] sm:$0x1]  ;;  %s2562_s13 = sshll.u32 %s2558_s4, 4  ;;  %s2563_s13 = int_to_ptr.hbm [resolvable:$true] %s2562_s13 }
  0x44   : > { %v556_v13 = vld [vmem:[#allocation2] sm:$0xff]  ;;  %2692 = vmatmul.msk.f32.vlgmr.msra.gmra.mxu2 %vm548_vm0, %v642_v12  ;;  %v561_v15 = vld [vmem:[#allocation2 + $0x9] sm:$0xff]  ;;  %v562_v19 = vld [vmem:[#allocation2 + $0x11] sm:$0x1]  ;;  %989 = vmatpush.msra.mxu0 %v970_v56  ;;  %s3146_s16 = sshra.s32 %s2563_s13, 4  ;;  %s3147_s16 = int_to_ptr.hbm [resolvable:$true] %s3146_s16 }
  0x45   : > { %v688_v14 = vld [vmem:[#allocation2 + $0x3] sm:$0xff]  ;;  %2688 = vmatmul.msk.f32.vlgmr.msra.gmra.mxu1 %vm548_vm0, %v556_v13  ;;  %v689_v18 = vld [vmem:[#allocation2 + $0xb] sm:$0xff]  ;;  %v690_v22 = vld [vmem:[#allocation2 + $0x13] sm:$0x1]  ;;  %1054 = vmatpush.msra.mxu2 %v1035_v43  ;;  %s3148_s23 = scalar_lea.hbm %s3147_s16, 1  ;;  %p3153_p3 = scmp.lt.s32.totalorder %s3147_s16, %s3776_s20 }
  0x46   : > { %2696 = vmatmul.msk.f32.vlgmr.msra.gmra.mxu3 %vm548_vm0, %v688_v14  ;;  %v557_v17 = vld [vmem:[#allocation2 + $0x8] sm:$0xff]  ;;  %v558_v21 = vld [vmem:[#allocation2 + $0x10] sm:$0x1]  ;;  %1018 = vmatpush.msra.mxu1 %v963_v57  ;;  %v1032_v13 = vld [vmem:[#allocation9 + $0x40] sm:$0xff]  ;;  %p3149_p0 = scmp.ne.s32.totalorder %s3147_s16, %s3148_s23  ;;  %p3154_p4 = scmp.lt.s32.totalorder %s3152_s21, %s3148_s23 }
  0x47   : > { %v734_v23 = vld [vmem:[#allocation2 + $0x4] sm:$0xff]  ;;  %v735_v27 = vld [vmem:[#allocation2 + $0xc] sm:$0xff]  ;;  %2783 = vmatpush.msra.mxu3 %v1035_v43  ;;  %990 = vmatpush.msra.mxu0 %v969_v60  ;;  %v967_v14 = vld [vmem:[#allocation9 + $0x20] sm:$0xff] }
  0x48   : > { %v826_v24 = vld [vmem:[#allocation2 + $0x6] sm:$0xff]  ;;  %v827_v28 = vld [vmem:[#allocation2 + $0xe] sm:$0xff]  ;;  %1019 = vmatpush.msra.mxu1 %v962_v61  ;;  %1055 = vmatpush.msra.mxu2 %v1034_v59  ;;  %p3150_p1 = pnand %p3149_p0, %p3331_p5  ;;  %p3155_p7 = por %p3154_p4, %p3153_p3 }
  0x49   : > { %v780_v25 = vld [vmem:[#allocation2 + $0x5] sm:$0xff]  ;;  %v781_v29 = vld [vmem:[#allocation2 + $0xd] sm:$0xff]  ;;  %2784 = vmatpush.msra.mxu3 %v1034_v59  ;;  %991 = vmatpush.msra.mxu0 %v968_v5 }
  0x4a   : > { %v872_v26 = vld [vmem:[#allocation2 + $0x7] sm:$0xff]  ;;  %v873_v30 = vld [vmem:[#allocation2 + $0xf] sm:$0xff]  ;;  %1020 = vmatpush.msra.mxu1 %v961_v6  ;;  %1056 = vmatpush.msra.mxu2 %v1033_v4  ;;  %p3151_p2 = pneg %p3150_p1 }
  0x4b   : > { %2685 = vmatmul.msk.f32.gmra.mxu0 %vm548_vm0, %v561_v15  ;;  %2785 = vmatpush.msra.mxu3 %v1033_v4  ;;  %v960_v15 = vld [vmem:[#allocation9] sm:$0xff]  ;;  %v1110_v43 = vld [vmem:[#allocation9 + $0x90] sm:$0xff]  ;;  %v1223_v5 = vld [vmem:[#allocation9 + $0xe8] sm:$0xff] }
  0x4c   : > { %2693 = vmatmul.msk.f32.gmra.mxu2 %vm548_vm0, %v643_v16  ;;  %992 = vmatpush.msra.mxu0 %v967_v14  ;;  %v1224_v4 = vld [vmem:[#allocation9 + $0xf0] sm:$0xff]  ;;  %p3156_p8 = pnand %p3155_p7, %p3151_p2 }
  0x4d   : > { %2689 = vmatmul.msk.f32.gmra.mxu1 %vm548_vm0, %v557_v17  ;;  %2786 = vmatpush.msra.mxu3 %v1032_v13 }
  0x4e   : > { %2697 = vmatmul.msk.f32.gmra.mxu3 %vm548_vm0, %v689_v18  ;;  %1021 = vmatpush.msra.mxu1 %v960_v15  ;;  %v1144_v15 = vld [vmem:[#allocation4 + $0xd] sm:$0x3] }
  0x4f   : > { %1057 = vmatpush.msra.mxu2 %v1032_v13 }
  0x53   : > { %2686 = vmatmul.msk.f32.gmra.mxu0 %vm548_vm0, %v562_v19 }
  0x54   : > { %2694 = vmatmul.msk.f32.gmra.mxu2 %vm548_vm0, %v644_v20  ;;  %v1073_v20 = vld [vmem:[#allocation9 + $0x78] sm:$0xff] }
  0x55   : > { %2690 = vmatmul.msk.f32.gmra.mxu1 %vm548_vm0, %v558_v21  ;;  %v1187_v21 = vld [vmem:[#allocation9 + $0xd8] sm:$0xff] }
  0x56   : > { %2698 = vmatmul.msk.f32.gmra.mxu3 %vm548_vm0, %v690_v22  ;;  %v1072_v22 = vld [vmem:[#allocation9 + $0x70] sm:$0xff] }
  0x5b   : > { %2700 = vmatmul.msk.f32.vlgmr.msrb.gmra.mxu0 %vm548_vm0, %v734_v23 }
  0x5c   : > { %2708 = vmatmul.msk.f32.vlgmr.msrb.gmra.mxu2 %vm548_vm0, %v826_v24  ;;  %v1186_v24 = vld [vmem:[#allocation9 + $0xd0] sm:$0xff] }
  0x5d   : > { %2704 = vmatmul.msk.f32.vlgmr.msrb.gmra.mxu1 %vm548_vm0, %v780_v25  ;;  %1206 = vmatpush.msrb.mxu2 %v1187_v21 }
  0x5e   : > { %2712 = vmatmul.msk.f32.vlgmr.msrb.gmra.mxu3 %vm548_vm0, %v872_v26 }
  0x5f   : > { %1092 = vmatpush.msrb.mxu3 %v1073_v20  ;;  %1207 = vmatpush.msrb.mxu2 %v1186_v24 }
  0x61   : > { %1093 = vmatpush.msrb.mxu3 %v1072_v22 }
  0x63   : > { %2701 = vmatmul.msk.f32.gmra.mxu0 %vm548_vm0, %v735_v27 }
  0x64   : > { %2709 = vmatmul.msk.f32.gmra.mxu2 %vm548_vm0, %v827_v28 }
  0x65   : > { %2705 = vmatmul.msk.f32.gmra.mxu1 %vm548_vm0, %v781_v29  ;;  %v1071_v29 = vld [vmem:[#allocation9 + $0x68] sm:$0xff] }
  0x66   : > { %2713 = vmatmul.msk.f32.gmra.mxu3 %vm548_vm0, %v873_v30  ;;  %v1185_v30 = vld [vmem:[#allocation9 + $0xc8] sm:$0xff] }
  0x67   : > { %1094 = vmatpush.msrb.mxu3 %v1071_v29  ;;  %1208 = vmatpush.msrb.mxu2 %v1185_v30  ;;  %v1286_v29 = vld [vmem:[#allocation11 + $0x18] sm:$0xff] }
  0x68   : > { %v1292_v30 = vld [vmem:[#allocation11 + $0x38] sm:$0xff] }
  0x6b   : > { %2702 = vmatmul.msk.f32.gmra.mxu0 %vm548_vm0, %v736_v31 }
  0x6c   : > { %2710 = vmatmul.msk.f32.gmra.mxu2 %vm548_vm0, %v828_v32 }
  0x6d   : > { %2706 = vmatmul.msk.f32.gmra.mxu1 %vm548_vm0, %v782_v33 }
  0x6e   : > { %2714 = vmatmul.msk.f32.gmra.mxu3 %vm548_vm0, %v874_v34  ;;  %v1070_v34 = vld [vmem:[#allocation9 + $0x60] sm:$0xff] }
  0x6f   : > { %1095 = vmatpush.msrb.mxu3 %v1070_v34  ;;  %v1289_v34 = vld [vmem:[#allocation11 + $0x28] sm:$0xff] }
  0xc0   : > { %v595_v35 = vpop.f32.mrf.mxu0 }
  0xc2   : > { %v633_v36 = vpop.f32.mrf.mxu1 }
  0xc3   : > { %v634_v45 = vadd.f32 %v633_v36, %v595_v35  ;;  %v1184_v35 = vld [vmem:[#allocation9 + $0xc0] sm:$0xff] }
  0xc4   : > { %1209 = vmatpush.msrb.mxu2 %v1184_v35 }
  0xc7   : > { %v676_v37 = vpop.f32.mrf.mxu2 }
  0xc8   : > { %v598_v39 = vpop.f32.mrf.mxu0  ;;  %v685_v47 = vadd.f32 %v676_v37, %v634_v45 }
  0xc9   : > { %v722_v38 = vpop.f32.mrf.mxu3 }
  0xca   : > { %v636_v40 = vpop.f32.mrf.mxu1  ;;  %v731_v49 = vadd.f32 %v722_v38, %v685_v47 }
  0xcb   : > { %v637_v52 = vadd.f32 %v636_v40, %v598_v39  ;;  %v1111_v40 = vld [vmem:[#allocation9 + $0x98] sm:$0xff] }
  0xcc   : > { %1130 = vmatpush.msrb.mxu0 %v1111_v40 }
  0xce   : > { %1131 = vmatpush.msrb.mxu0 %v1110_v43 }
  0xcf   : > { %v679_v41 = vpop.f32.mrf.mxu2 }
  0xd0   : > { %v601_v44 = vpop.f32.mrf.mxu0  ;;  %v686_v55 = vadd.f32 %v679_v41, %v637_v52  ;;  %v1149_v41 = vld [vmem:[#allocation9 + $0xb8] sm:$0xff]  ;;  %v1146_v52 = vld [vmem:[#allocation9 + $0xa0] sm:$0xff] }
  0xd1   : > { %v725_v42 = vpop.f32.mrf.mxu3  ;;  %1168 = vmatpush.msrb.mxu1 %v1149_v41 }
  0xd2   : > { %v639_v46 = vpop.f32.mrf.mxu1  ;;  %v732_v1 = vadd.f32 %v725_v42, %v686_v55 }
  0xd3   : > { %v640_v9 = vadd.f32 %v639_v46, %v601_v44  ;;  %v1148_v44 = vld [vmem:[#allocation9 + $0xb0] sm:$0xff] }
  0xd4   : > { %1169 = vmatpush.msrb.mxu1 %v1148_v44 }
  0xd7   : > { %v682_v48 = vpop.f32.mrf.mxu2 }
  0xd8   : > { %v768_v51 = vpop.f32.mrf.mxu0  ;;  %v687_v16 = vadd.f32 %v682_v48, %v640_v9  ;;  %v1109_v48 = vld [vmem:[#allocation9 + $0x88] sm:$0xff]  ;;  %v1222_v9 = vld [vmem:[#allocation9 + $0xe0] sm:$0xff] }
  0xd9   : > { %v728_v50 = vpop.f32.mrf.mxu3  ;;  %v777_v53 = vadd.f32 %v768_v51, %v731_v49  ;;  %v1147_v49 = vld [vmem:[#allocation9 + $0xa8] sm:$0xff]  ;;  %v1108_v51 = vld [vmem:[#allocation9 + $0x80] sm:$0xff]  ;;  %1132 = vmatpush.msrb.mxu0 %v1109_v48  ;;  %v3491_v48 = vld [vmem:[#allocation12 + $0x18] sm:$0xff] }
  0xda   : > { %v814_v54 = vpop.f32.mrf.mxu1  ;;  %v733_v25 = vadd.f32 %v728_v50, %v687_v16  ;;  %1170 = vmatpush.msrb.mxu1 %v1147_v49  ;;  %v3493_v49 = vld [vmem:[#allocation12] sm:$0xff] }
  0xdb   : > { %v823_v58 = vadd.f32 %v814_v54, %v777_v53  ;;  %1133 = vmatpush.msrb.mxu0 %v1108_v51  ;;  %v3499_v51 = vld [vmem:[#allocation12 + $0x28] sm:$0xff] }
  0xdc   : > { %1171 = vmatpush.msrb.mxu1 %v1146_v52  ;;  %v3501_v52 = vld [vmem:[#allocation12 + $0x38] sm:$0xff] }
  0xdf   : > { %v860_v62 = vpop.f32.mrf.mxu2 }
  0xe0   : > { %v869_v2 = vadd.f32 %v860_v62, %v823_v58  ;;  %v771_v7 = vpop.f32.mrf.mxu0  ;;  %v1225_v62 = vld [vmem:[#allocation9 + $0xf8] sm:$0xff] }
  0xe1   : > { %v906_v3 = vpop.f32.mrf.mxu3  ;;  %v778_v10 = vadd.f32 %v771_v7, %v732_v1 }
  0xe2   : > { %v915_v11 = vadd.f32 %v906_v3, %v869_v2  ;;  %v817_v12 = vpop.f32.mrf.mxu1 }
  0xe3   : > { %v824_v19 = vadd.f32 %v817_v12, %v778_v10 }
  0xe4   : > { %v922_v17 = vmul.f32 %v3452_v63, %v915_v11  ;;  %v1182_v11 = vld [vmem:[#allocation4 + $0xe] sm:$0x3] }
  0xe6   : > { %v929_v18 = vadd.f32 %v3457_v8, %v922_v17 }
  0xe7   : > { %v863_v23 = vpop.f32.mrf.mxu2 }
  0xe8   : > { %v932_v26 = vmax.f32 %v929_v18, 0.0  ;;  %v870_v27 = vadd.f32 %v863_v23, %v824_v19  ;;  %v774_v31 = vpop.f32.mrf.mxu0  ;;  %v1220_v18 = vld [vmem:[#allocation4 + $0xf] sm:$0x3] }
  0xe9   : > { %v909_v28 = vpop.f32.mrf.mxu3  ;;  %v779_v32 = vadd.f32 %v774_v31, %v733_v25 }
  0xea   : > { %940 = vst.msk [vmem:[#allocation3 + $0x1] sm:$0xff] %vm935_vm2, %v932_v26  ;;  %v916_v33 = vadd.f32 %v909_v28, %v870_v27  ;;  %v820_v36 = vpop.f32.mrf.mxu1  ;;  %v1283_v28 = vld [vmem:[#allocation11 + $0x8] sm:$0xff] }
  0xeb   : > { %v825_v39 = vadd.f32 %v820_v36, %v779_v32  ;;  %v1282_v32 = vld [vmem:[#allocation11] sm:$0xff]  ;;  %v1291_v36 = vld [vmem:[#allocation11 + $0x30] sm:$0xff] }
  0xec   : > { %v923_v37 = vmul.f32 %v3452_v63, %v916_v33  ;;  %v1285_v33 = vld [vmem:[#allocation11 + $0x10] sm:$0xff] }
  0xee   : > { %v930_v38 = vadd.f32 %v3457_v8, %v923_v37  ;;  %v1288_v37 = vld [vmem:[#allocation11 + $0x20] sm:$0xff] }
  0xef   : > { %v866_v42 = vpop.f32.mrf.mxu2 }
  0xf0   : > { %v933_v45 = vmax.f32 %v930_v38, 0.0  ;;  %v871_v46 = vadd.f32 %v866_v42, %v825_v39 }
  0xf1   : > { %v912_v47 = vpop.f32.mrf.mxu3 }
  0xf2   : > { %v917_v50 = vadd.f32 %v912_v47, %v871_v46  ;;  %941 = vst.msk [vmem:[#allocation3 + $0x9] sm:$0xff] %vm935_vm2, %v933_v45  ;;  %v3489_v47 = vld [vmem:[#allocation12 + $0x8] sm:$0xff] }
  0xf4   : > { %v924_v53 = vmul.f32 %v3452_v63, %v917_v50  ;;  %v3497_v50 = vld [vmem:[#allocation12 + $0x10] sm:$0xff] }
  0xf6   : > { %v931_v54 = vadd.f32 %v3457_v8, %v924_v53  ;;  %v3505_v53 = vld [vmem:[#allocation12 + $0x20] sm:$0xff] }
  0xf8   : > { %v934_v55 = vmax.f32 %v931_v54, 0.0  ;;  %v3507_v54 = vld [vmem:[#allocation12 + $0x30] sm:$0xff] }
  0xf9   : > { %v944_v56 = vld [vmem:[#allocation3] ss:$2 sm:$0xff]  ;;  %v948_v57 = vld [vmem:[#allocation3 + $0x1] ss:$2 sm:$0xff] }
  0xfa   : > { %943 = vst.msk [vmem:[#allocation3 + $0x11] sm:$0x1] %vm942_vm4, %v934_v55  ;;  %v951_v58 = vmax.f32 %v944_v56, %v948_v57  ;;  %v946_v59 = vld [vmem:[#allocation3 + $0x10] ss:$2 sm:$0x1] }
  0xfb   : > { %v2884_v57 = vld [vmem:[%s3738_s5] ss:$0 sm:$0xff] }
  0xfc   : > { %956 = vst.msk [vmem:[#allocation4 + $0x4] sm:$0xff] %vm935_vm2, %v951_v58 }
 0x101   : > { %v950_v60 = vld [vmem:[#allocation3 + $0x11] ss:$2 sm:$0x1] }
 0x102   : > { %v952_v61 = vmax.f32 %v946_v59, %v950_v60 }
 0x103   : > { %v964_v1 = vld [vmem:[#allocation4 + $0x1] sm:$0xff]  ;;  %v1030_v3 = vld [vmem:[#allocation4 + $0xa] sm:$0x3] }
 0x104   : > { %957 = vst.msk [vmem:[#allocation4 + $0xc] sm:$0x1] %vm942_vm4, %v952_v61  ;;  %v958_v63 = vld [vmem:[#allocation4] sm:$0xff]  ;;  %2715 = vmatmul.msk.f32.vlgmr.msra.gmra.mxu0 %vm935_vm2, %v964_v1  ;;  %2720 = vmatmul.msk.f32.vlgmr.msra.gmra.mxu3 %vm935_vm2, %v1030_v3  ;;  %v965_v7 = vld [vmem:[#allocation4 + $0x9] sm:$0x3] }
 0x105   : > { %v1029_v2 = vld [vmem:[#allocation4 + $0x2] sm:$0xff]  ;;  %2717 = vmatmul.msk.f32.vlgmr.msra.gmra.mxu1 %vm935_vm2, %v958_v63  ;;  %1244 = vmatpush.msra.mxu3 %v1225_v62  ;;  %v2885_v61 = vld [vmem:[%s3739_s6] ss:$0 sm:$0xff] }
 0x106   : > { %2719 = vmatmul.msk.f32.vlgmr.msra.gmra.mxu2 %vm935_vm2, %v1029_v2  ;;  %v959_v8 = vld [vmem:[#allocation4 + $0x8] sm:$0x3]  ;;  %1321 = vmatpush.msra.mxu0 %v1283_v28 }
 0x107   : > { %1245 = vmatpush.msra.mxu3 %v1224_v4  ;;  %v1067_v10 = vld [vmem:[#allocation4 + $0x3] sm:$0xff]  ;;  %1341 = vmatpush.msra.mxu1 %v1286_v29 }
 0x108   : > { %v1105_v12 = vld [vmem:[#allocation4 + $0x4] sm:$0xff]  ;;  %1361 = vmatpush.msra.mxu2 %v1289_v34  ;;  %1322 = vmatpush.msra.mxu0 %v1282_v32 }
 0x109   : > { %1246 = vmatpush.msra.mxu3 %v1223_v5  ;;  %1342 = vmatpush.msra.mxu1 %v1285_v33 }
 0x10a   : > { %1362 = vmatpush.msra.mxu2 %v1288_v37 }
 0x10b   : > { %v1181_v6 = vld [vmem:[#allocation4 + $0x6] sm:$0xff]  ;;  %1247 = vmatpush.msra.mxu3 %v1222_v9 }
 0x10c   : > { %2716 = vmatmul.msk.f32.gmra.mxu0 %vm935_vm2, %v965_v7  ;;  %2721 = vmatmul.msk.f32.vlgmr.msrb.gmra.mxu3 %vm935_vm2, %v1067_v10  ;;  %v1143_v13 = vld [vmem:[#allocation4 + $0x5] sm:$0xff] }
 0x10d   : > { %2718 = vmatmul.msk.f32.gmra.mxu1 %vm935_vm2, %v959_v8  ;;  %v1068_v14 = vld [vmem:[#allocation4 + $0xb] sm:$0x3]  ;;  %1381 = vmatpush.msrb.mxu3 %v1292_v30 }
 0x10e   : > { %2727 = vmatmul.msk.f32.vlgmr.msrb.gmra.mxu2 %vm935_vm2, %v1181_v6  ;;  %v1106_v16 = vld [vmem:[#allocation4 + $0xc] sm:$0x3] }
 0x10f   : > { %v1219_v17 = vld [vmem:[#allocation4 + $0x7] sm:$0xff]  ;;  %1382 = vmatpush.msrb.mxu3 %v1291_v36  ;;  %1484 = vmatpush.msrb.mxu2 %v3499_v51 }
 0x111   : > { %1485 = vmatpush.msrb.mxu2 %v3505_v53 }
 0x114   : > { %2723 = vmatmul.msk.f32.vlgmr.msrb.gmra.mxu0 %vm935_vm2, %v1105_v12  ;;  %2722 = vmatmul.msk.f32.gmra.mxu3 %vm935_vm2, %v1068_v14 }
 0x115   : > { %2725 = vmatmul.msk.f32.vlgmr.msrb.gmra.mxu1 %vm935_vm2, %v1143_v13  ;;  %1404 = vmatpush.msrb.mxu0 %v3489_v47 }
 0x116   : > { %2728 = vmatmul.msk.f32.gmra.mxu2 %vm935_vm2, %v1182_v11  ;;  %1444 = vmatpush.msrb.mxu1 %v3491_v48 }
 0x117   : > { %1405 = vmatpush.msrb.mxu0 %v3493_v49 }
 0x118   : > { %1445 = vmatpush.msrb.mxu1 %v3497_v50 }
 0x11c   : > { %2724 = vmatmul.msk.f32.gmra.mxu0 %vm935_vm2, %v1106_v16  ;;  %2729 = vmatmul.msk.f32.vlgmr.msra.gmra.mxu3 %vm935_vm2, %v1219_v17 }
 0x11d   : > { %2726 = vmatmul.msk.f32.gmra.mxu1 %vm935_vm2, %v1144_v15  ;;  %1506 = vmatpush.msra.mxu3 %v3501_v52 }
 0x11f   : > { %1507 = vmatpush.msra.mxu3 %v3507_v54 }
 0x124   : > { %2730 = vmatmul.msk.f32.gmra.mxu3 %vm935_vm2, %v1220_v18 }
 0x181   : > { %v994_v19 = vpop.f32.mrf.mxu0 }
 0x182   : > { %v1023_v20 = vpop.f32.mrf.mxu1 }
 0x183   : > { %v1024_v25 = vadd.f32 %v1023_v20, %v994_v19 }
 0x187   : > { %v1062_v21 = vpop.f32.mrf.mxu3 }
 0x189   : > { %v997_v22 = vpop.f32.mrf.mxu0  ;;  %v1059_v23 = vpop.f32.mrf.mxu2 }
 0x18a   : > { %v1026_v24 = vpop.f32.mrf.mxu1  ;;  %v1065_v27 = vadd.f32 %v1059_v23, %v1024_v25 }
 0x18b   : > { %v1027_v38 = vadd.f32 %v1026_v24, %v997_v22 }
 0x18d   : > { %v1066_v42 = vadd.f32 %v1062_v21, %v1027_v38 }
 0x18f   : > { %v1097_v26 = vpop.f32.mrf.mxu3 }
 0x190   : > { %v1103_v35 = vadd.f32 %v1097_v26, %v1065_v27 }
 0x191   : > { %v1135_v31 = vpop.f32.mrf.mxu0  ;;  %v1211_v45 = vpop.f32.mrf.mxu2 }
 0x192   : > { %v1141_v39 = vadd.f32 %v1135_v31, %v1103_v35  ;;  %v1173_v40 = vpop.f32.mrf.mxu1 }
 0x194   : > { %v1179_v43 = vadd.f32 %v1173_v40, %v1141_v39 }
 0x196   : > { %v1217_v56 = vadd.f32 %v1211_v45, %v1179_v43 }
 0x197   : > { %v1100_v41 = vpop.f32.mrf.mxu3 }
 0x198   : > { %v1104_v44 = vadd.f32 %v1100_v41, %v1066_v42 }
 0x199   : > { %v1138_v46 = vpop.f32.mrf.mxu0  ;;  %v1214_v63 = vpop.f32.mrf.mxu2 }
 0x19a   : > { %v1142_v55 = vadd.f32 %v1138_v46, %v1104_v44  ;;  %v1176_v58 = vpop.f32.mrf.mxu1 }
 0x19c   : > { %v1180_v62 = vadd.f32 %v1176_v58, %v1142_v55 }
 0x19e   : > { %v1218_v3 = vadd.f32 %v1214_v63, %v1180_v62 }
 0x19f   : > { %v1249_v59 = vpop.f32.mrf.mxu3 }
 0x1a0   : > { %v1255_v60 = vadd.f32 %v1249_v59, %v1217_v56 }
 0x1a2   : > { %v1261_v1 = vmul.f32 %v2884_v57, %v1255_v60 }
 0x1a4   : > { %v1267_v2 = vadd.f32 %v2885_v61, %v1261_v1 }
 0x1a6   : > { %v1269_v4 = vmax.f32 %v1267_v2, 0.0 }
 0x1a7   : > { %v1252_v5 = vpop.f32.mrf.mxu3 }
 0x1a8   : > { %v1256_v6 = vadd.f32 %v1252_v5, %v1218_v3  ;;  %1275 = vst.msk [vmem:[#allocation5 + $0x1] sm:$0xff] %vm1271_vm5, %v1269_v4 }
 0x1aa   : > { %v1262_v7 = vmul.f32 %v2884_v57, %v1256_v6 }
 0x1ac   : > { %v1268_v8 = vadd.f32 %v2885_v61, %v1262_v7 }
 0x1ae   : > { %v1270_v9 = vmax.f32 %v1268_v8, 0.0 }
 0x1b0   : > { %1277 = vst.msk [vmem:[#allocation5 + $0x9] sm:$0x3] %vm1276_vm7, %v1270_v9 }
 0x1b7   : > { %v1278_v10 = vld [vmem:[#allocation5] ss:$2 sm:$0x3f]  ;;  %v1280_v11 = vld [vmem:[#allocation5 + $0x1] ss:$2 sm:$0x3f] }
 0x1b8   : > { %v1281_v12 = vmax.f32 %v1278_v10, %v1280_v11 }
 0x1ba   : > { %2731 = vmatmul.msk.f32.vlgmr.msra.gmra.mxu0 %vm1271_vm5, %v1281_v12  ;;  %2732 = vmatmul.msk.f32.vlgmr.msra.gmra.mxu1 %vm1271_vm5, %v1281_v12 }
 0x1bb   : > { %2733 = vmatmul.msk.f32.vlgmr.msra.gmra.mxu2 %vm1271_vm5, %v1281_v12  ;;  %2734 = vmatmul.msk.f32.vlgmr.msrb.gmra.mxu3 %vm1271_vm5, %v1281_v12 }
 0x1bc   : > { %1554 = vmatpush.msra.mxu0 %v3489_v47  ;;  %1597 = vmatpush.msra.mxu1 %v3491_v48 }
 0x1bd   : > { %1640 = vmatpush.msra.mxu2 %v3499_v51  ;;  %1665 = vmatpush.msrb.mxu3 %v3501_v52 }
 0x1be   : > { %1555 = vmatpush.msra.mxu0 %v3493_v49  ;;  %1598 = vmatpush.msra.mxu1 %v3497_v50 }
 0x1bf   : > { %1641 = vmatpush.msra.mxu2 %v3505_v53  ;;  %1666 = vmatpush.msrb.mxu3 %v3507_v54 }
 0x1c2   : > { %1406 = vmatmul.f32.vlgmr.msrb.gmra.mxu0 %v3217_v0  ;;  %1446 = vmatmul.f32.vlgmr.msrb.gmra.mxu1 %v3217_v0 }
 0x1c3   : > { %1486 = vmatmul.f32.vlgmr.msrb.gmra.mxu2 %v3217_v0  ;;  %1508 = vmatmul.f32.vlgmr.msra.gmra.mxu3 %v3217_v0 }
 0x1c4   : > { %1720 = vmatpush.msrb.mxu0 %v3489_v47  ;;  %1763 = vmatpush.msrb.mxu1 %v3491_v48 }
 0x1c5   : > { %1806 = vmatpush.msrb.mxu2 %v3499_v51  ;;  %1831 = vmatpush.msra.mxu3 %v3501_v52 }
 0x1c6   : > { %1721 = vmatpush.msrb.mxu0 %v3493_v49  ;;  %1764 = vmatpush.msrb.mxu1 %v3497_v50 }
 0x1c7   : > { %1807 = vmatpush.msrb.mxu2 %v3505_v53  ;;  %1832 = vmatpush.msra.mxu3 %v3507_v54 }
 0x237   : > { %v3544_v13 = vpop.f32.mrf.mxu0  ;;  %v3546_v14 = vpop.f32.mrf.mxu1 }
 0x23e   : > { %v3548_v0 = vpop.f32.mrf.mxu3  ;;  %v3552_v21 = vpop.f32.mrf.mxu2 }
 0x23f   : > { %v1407_v15 = vpop.f32.mrf.mxu0  ;;  %v1447_v16 = vpop.f32.mrf.mxu1 }
 0x240   : > { %v1410_v17 = vadd.f32 %v1407_v15, %v3544_v13  ;;  %v1450_v18 = vadd.f32 %v1447_v16, %v3546_v14 }
 0x242   : > { %v2735_v19 = vmul.f32 -1.442695, %v1410_v17  ;;  %v2736_v20 = vmul.f32 -1.442695, %v1450_v18 }
 0x244   : > { %2886 = vpow2.f32 %v2735_v19 }
 0x245   : > { %2888 = vpow2.f32 %v2736_v20 }
 0x246   : > { %v1509_v22 = vpop.f32.mrf.mxu3  ;;  %v1487_v29 = vpop.f32.mrf.mxu2 }
 0x247   : > { %v1512_v23 = vadd.f32 %v1509_v22, %v3548_v0  ;;  %v1490_v33 = vadd.f32 %v1487_v29, %v3552_v21 }
 0x249   : > { %v2737_v24 = vmul.f32 -1.442695, %v1512_v23 }
 0x24a   : > { %v2887_v25 = vpop.eup %2886 }
 0x24b   : > { %v2889_v26 = vpop.eup %2888  ;;  %v1414_v27 = vadd.f32 1.0, %v2887_v25  ;;  %2890 = vpow2.f32 %v2737_v24 }
 0x24c   : > { %v1454_v28 = vadd.f32 1.0, %v2889_v26 }
 0x24d   : > { %2892 = vrcp.f32 %v1414_v27  ;;  %v1426_v39 = vand.u32 2147483648, %v1414_v27  ;;  %v1424_v42 = vand.u32 2147483647, %v1414_v27  ;;  %vm1420_vm10 = vweird.f32 %v1414_v27 }
 0x24e   : > { %2894 = vrcp.f32 %v1454_v28  ;;  %v1466_v40 = vand.u32 2147483648, %v1454_v28  ;;  %v1464_v44 = vand.u32 2147483647, %v1454_v28  ;;  %vm1460_vm11 = vweird.f32 %v1454_v28 }
 0x24f   : > { %v1427_v55 = vor.u32 1.1754944e-38, %v1426_v39  ;;  %vm1425_vm13 = vcmp.eq.f32.partialorder %v1424_v42, 8.507059e+37 }
 0x250   : > { %v1467_v58 = vor.u32 1.1754944e-38, %v1466_v40  ;;  %vm1465_vm15 = vcmp.eq.f32.partialorder %v1464_v44, 8.507059e+37 }
 0x251   : > { %v2891_v30 = vpop.eup %2890 }
 0x252   : > { %v1516_v31 = vadd.f32 1.0, %v2891_v30 }
 0x253   : > { %v2893_v32 = vpop.eup %2892 }
 0x254   : > { %v2895_v34 = vpop.eup %2894  ;;  %v1416_v35 = vmul.f32 %v2893_v32, %v1414_v27  ;;  %2896 = vrcp.f32 %v1516_v31  ;;  %vm1421_vm8 = vweird.f32 %v2893_v32  ;;  %v1528_v7 = vand.u32 2147483648, %v1516_v31 }
 0x255   : > { %v1456_v36 = vmul.f32 %v2895_v34, %v1454_v28  ;;  %2898 = vtanh.f32 %v1490_v33  ;;  %vm1461_vm9 = vweird.f32 %v2895_v34  ;;  %vm1422_vm12 = vmor %vm1420_vm10, %vm1421_vm8  ;;  %vm1522_vm1 = vweird.f32 %v1516_v31 }
 0x256   : > { %v1417_v37 = vsub.f32 1.0, %v1416_v35  ;;  %vm1462_vm14 = vmor %vm1460_vm11, %vm1461_vm9  ;;  %v1526_v8 = vand.u32 2147483647, %v1516_v31  ;;  %v1529_v10 = vor.u32 1.1754944e-38, %v1528_v7 }
 0x257   : > { %v1457_v38 = vsub.f32 1.0, %v1456_v36 }
 0x258   : > { %v1418_v41 = vmul.f32 %v2893_v32, %v1417_v37  ;;  %vm1527_vm3 = vcmp.eq.f32.partialorder %v1526_v8, 8.507059e+37 }
 0x259   : > { %v1458_v43 = vmul.f32 %v2895_v34, %v1457_v38 }
 0x25a   : > { %v2897_v45 = vpop.eup %2896  ;;  %v1419_v46 = vadd.f32 %v2893_v32, %v1418_v41 }
 0x25b   : > { %v1459_v56 = vadd.f32 %v2895_v34, %v1458_v43  ;;  %v1518_v57 = vmul.f32 %v2897_v45, %v1516_v31  ;;  %v2899_v60 = vpop.eup %2898  ;;  %vm1523_vm0 = vweird.f32 %v2897_v45 }
 0x25c   : > { %v1423_v59 = vsel %vm1422_vm12, %v2893_v32, %v1419_v46  ;;  %vm1524_vm2 = vmor %vm1522_vm1, %vm1523_vm0 }
 0x25d   : > { %v1428_v61 = vsel %vm1425_vm13, %v1427_v55, %v1423_v59  ;;  %v1463_v62 = vsel %vm1462_vm14, %v2895_v34, %v1459_v56  ;;  %v1519_v1 = vsub.f32 1.0, %v1518_v57 }
 0x25e   : > { %v1468_v63 = vsel %vm1465_vm15, %v1467_v58, %v1463_v62  ;;  %v1533_v2 = vmul.f32 %v2899_v60, %v1428_v61 }
 0x25f   : > { %v1532_v3 = vmul.f32 0.0, %v1468_v63  ;;  %v1520_v4 = vmul.f32 %v2897_v45, %v1519_v1 }
 0x261   : > { %v3556_v5 = vadd.f32 %v1533_v2, %v1532_v3  ;;  %v1521_v6 = vadd.f32 %v2897_v45, %v1520_v4 }
 0x263   : > { %2900 = vtanh.f32 %v3556_v5  ;;  %v1525_v9 = vsel %vm1524_vm2, %v2897_v45, %v1521_v6  ;;  %v1695_v1 = vrot.slane %v3556_v5, 7 }
 0x264   : > { %v1530_v12 = vsel %vm1527_vm3, %v1529_v10, %v1525_v9 }
 0x269   : > { %v2901_v11 = vpop.eup %2900 }
 0x26a   : > { %v3559_v15 = vmul.f32 %v2901_v11, %v1530_v12 }
 0x26c   : > { %2738 = vmatmul.msk.f32.vlgmr.msra.gmra.mxu0 %vm1271_vm5, %v3559_v15  ;;  %2740 = vmatmul.msk.f32.vlgmr.msra.gmra.mxu1 %vm1271_vm5, %v3559_v15 }
 0x26d   : > { %2742 = vmatmul.msk.f32.vlgmr.msra.gmra.mxu2 %vm1271_vm5, %v3559_v15  ;;  %2743 = vmatmul.msk.f32.vlgmr.msrb.gmra.mxu3 %vm1271_vm5, %v3559_v15 }
 0x26e   : > { %1886 = vmatpush.msra.mxu0 %v3489_v47  ;;  %1929 = vmatpush.msra.mxu1 %v3491_v48 }
 0x26f   : > { %1972 = vmatpush.msra.mxu2 %v3499_v51  ;;  %1997 = vmatpush.msrb.mxu3 %v3501_v52 }
 0x270   : > { %1887 = vmatpush.msra.mxu0 %v3493_v49  ;;  %1930 = vmatpush.msra.mxu1 %v3497_v50 }
 0x271   : > { %1973 = vmatpush.msra.mxu2 %v3505_v53  ;;  %1998 = vmatpush.msrb.mxu3 %v3507_v54 }
 0x2e9   : > { %v1557_v16 = vpop.f32.mrf.mxu0  ;;  %v1600_v17 = vpop.f32.mrf.mxu1 }
 0x2ea   : > { %v1561_v18 = vrot.slane %v1557_v16, 7  ;;  %v1604_v19 = vrot.slane %v1600_v17, 7 }
 0x2ec   : > { %v1563_v20 = vadd.f32 %v1561_v18, %v3544_v13  ;;  %v1606_v22 = vadd.f32 %v1604_v19, %v3546_v14 }
 0x2ee   : > { %v2739_v23 = vmul.f32 -1.442695, %v1563_v20  ;;  %v2741_v24 = vmul.f32 -1.442695, %v1606_v22 }
 0x2f0   : > { %2902 = vpow2.f32 %v2739_v23  ;;  %v1668_v25 = vpop.f32.mrf.mxu3  ;;  %v1643_v33 = vpop.f32.mrf.mxu2 }
 0x2f1   : > { %2904 = vpow2.f32 %v2741_v24  ;;  %v1672_v26 = vrot.slane %v1668_v25, 7  ;;  %v1647_v34 = vrot.slane %v1643_v33, 7 }
 0x2f3   : > { %v1674_v27 = vadd.f32 %v1672_v26, %v3548_v0  ;;  %v1649_v38 = vadd.f32 %v1647_v34, %v3552_v21 }
 0x2f5   : > { %v2744_v28 = vmul.f32 -1.442695, %v1674_v27 }
 0x2f6   : > { %v2903_v29 = vpop.eup %2902 }
 0x2f7   : > { %v2905_v30 = vpop.eup %2904  ;;  %v1567_v31 = vadd.f32 1.0, %v2903_v29  ;;  %2906 = vpow2.f32 %v2744_v28 }
 0x2f8   : > { %v1610_v32 = vadd.f32 1.0, %v2905_v30 }
 0x2f9   : > { %2908 = vrcp.f32 %v1567_v31  ;;  %v1579_v44 = vand.u32 2147483648, %v1567_v31  ;;  %v1577_v55 = vand.u32 2147483647, %v1567_v31  ;;  %vm1573_vm7 = vweird.f32 %v1567_v31 }
 0x2fa   : > { %2910 = vrcp.f32 %v1610_v32  ;;  %v1622_v45 = vand.u32 2147483648, %v1610_v32  ;;  %v1620_v57 = vand.u32 2147483647, %v1610_v32  ;;  %vm1616_vm8 = vweird.f32 %v1610_v32 }
 0x2fb   : > { %v1580_v60 = vor.u32 1.1754944e-38, %v1579_v44  ;;  %vm1578_vm11 = vcmp.eq.f32.partialorder %v1577_v55, 8.507059e+37 }
 0x2fc   : > { %v1623_v63 = vor.u32 1.1754944e-38, %v1622_v45  ;;  %vm1621_vm12 = vcmp.eq.f32.partialorder %v1620_v57, 8.507059e+37 }
 0x2fd   : > { %v2907_v35 = vpop.eup %2906 }
 0x2fe   : > { %v1678_v36 = vadd.f32 1.0, %v2907_v35 }
 0x2ff   : > { %v2909_v37 = vpop.eup %2908 }
 0x300   : > { %v2911_v39 = vpop.eup %2910  ;;  %v1569_v40 = vmul.f32 %v2909_v37, %v1567_v31  ;;  %2912 = vrcp.f32 %v1678_v36  ;;  %vm1574_vm4 = vweird.f32 %v2909_v37  ;;  %v1690_v5 = vand.u32 2147483648, %v1678_v36 }
 0x301   : > { %v1612_v41 = vmul.f32 %v2911_v39, %v1610_v32  ;;  %2914 = vtanh.f32 %v1649_v38  ;;  %vm1617_vm6 = vweird.f32 %v2911_v39  ;;  %vm1575_vm9 = vmor %vm1573_vm7, %vm1574_vm4  ;;  %vm1684_vm14 = vweird.f32 %v1678_v36 }
 0x302   : > { %v1570_v42 = vsub.f32 1.0, %v1569_v40  ;;  %vm1618_vm10 = vmor %vm1616_vm8, %vm1617_vm6  ;;  %v1688_v17 = vand.u32 2147483647, %v1678_v36  ;;  %v1691_v19 = vor.u32 1.1754944e-38, %v1690_v5 }
 0x303   : > { %v1613_v43 = vsub.f32 1.0, %v1612_v41 }
 0x304   : > { %v1571_v46 = vmul.f32 %v2909_v37, %v1570_v42  ;;  %vm1689_vm0 = vcmp.eq.f32.partialorder %v1688_v17, 8.507059e+37 }
 0x305   : > { %v1614_v56 = vmul.f32 %v2911_v39, %v1613_v43 }
 0x306   : > { %v2913_v58 = vpop.eup %2912  ;;  %v1572_v59 = vadd.f32 %v2909_v37, %v1571_v46 }
 0x307   : > { %v1615_v61 = vadd.f32 %v2911_v39, %v1614_v56  ;;  %v1680_v62 = vmul.f32 %v2913_v58, %v1678_v36  ;;  %v2915_v3 = vpop.eup %2914  ;;  %vm1685_vm13 = vweird.f32 %v2913_v58 }
 0x308   : > { %v1576_v2 = vsel %vm1575_vm9, %v2909_v37, %v1572_v59  ;;  %vm1686_vm15 = vmor %vm1684_vm14, %vm1685_vm13 }
 0x309   : > { %v1581_v4 = vsel %vm1578_vm11, %v1580_v60, %v1576_v2  ;;  %v1619_v6 = vsel %vm1618_vm10, %v2911_v39, %v1615_v61  ;;  %v1681_v7 = vsub.f32 1.0, %v1680_v62 }
 0x30a   : > { %v1624_v8 = vsel %vm1621_vm12, %v1623_v63, %v1619_v6  ;;  %v1698_v9 = vmul.f32 %v2915_v3, %v1581_v4 }
 0x30b   : > { %v1697_v10 = vmul.f32 %v1695_v1, %v1624_v8  ;;  %v1682_v11 = vmul.f32 %v2913_v58, %v1681_v7 }
 0x30d   : > { %v3582_v12 = vadd.f32 %v1698_v9, %v1697_v10  ;;  %v1683_v16 = vadd.f32 %v2913_v58, %v1682_v11 }
 0x30f   : > { %2916 = vtanh.f32 %v3582_v12  ;;  %v1687_v18 = vsel %vm1686_vm15, %v2913_v58, %v1683_v16  ;;  %v1861_v9 = vrot.slane %v3582_v12, 7 }
 0x310   : > { %v1692_v22 = vsel %vm1689_vm0, %v1691_v19, %v1687_v18 }
 0x315   : > { %v2917_v20 = vpop.eup %2916 }
 0x316   : > { %v1701_v23 = vmul.f32 %v2917_v20, %v1692_v22 }
 0x318   : > { %v3585_v24 = vrot.slane %v1701_v23, 1 }
 0x31a   : > { %2745 = vmatmul.msk.f32.vlgmr.msrb.gmra.mxu0 %vm1271_vm5, %v3585_v24  ;;  %2747 = vmatmul.msk.f32.vlgmr.msrb.gmra.mxu1 %vm1271_vm5, %v3585_v24 }
 0x31b   : > { %2749 = vmatmul.msk.f32.vlgmr.msrb.gmra.mxu2 %vm1271_vm5, %v3585_v24  ;;  %2750 = vmatmul.msk.f32.vlgmr.msra.gmra.mxu3 %vm1271_vm5, %v3585_v24 }
 0x31c   : > { %2052 = vmatpush.msrb.mxu0 %v3489_v47  ;;  %2095 = vmatpush.msrb.mxu1 %v3491_v48 }
 0x31d   : > { %2138 = vmatpush.msrb.mxu2 %v3499_v51  ;;  %2163 = vmatpush.msra.mxu3 %v3501_v52 }
 0x31e   : > { %2053 = vmatpush.msrb.mxu0 %v3493_v49  ;;  %2096 = vmatpush.msrb.mxu1 %v3497_v50 }
 0x31f   : > { %2139 = vmatpush.msrb.mxu2 %v3505_v53  ;;  %2164 = vmatpush.msra.mxu3 %v3507_v54 }
 0x397   : > { %v1723_v25 = vpop.f32.mrf.mxu0  ;;  %v1766_v26 = vpop.f32.mrf.mxu1 }
 0x398   : > { %v1727_v27 = vrot.slane %v1723_v25, 6  ;;  %v1770_v28 = vrot.slane %v1766_v26, 6 }
 0x39a   : > { %v1729_v29 = vadd.f32 %v1727_v27, %v3544_v13  ;;  %v1772_v30 = vadd.f32 %v1770_v28, %v3546_v14 }
 0x39c   : > { %v2746_v31 = vmul.f32 -1.442695, %v1729_v29  ;;  %v2748_v32 = vmul.f32 -1.442695, %v1772_v30 }
 0x39e   : > { %2918 = vpow2.f32 %v2746_v31  ;;  %v1834_v33 = vpop.f32.mrf.mxu3  ;;  %v1809_v41 = vpop.f32.mrf.mxu2 }
 0x39f   : > { %2920 = vpow2.f32 %v2748_v32  ;;  %v1838_v34 = vrot.slane %v1834_v33, 6  ;;  %v1813_v42 = vrot.slane %v1809_v41, 6 }
 0x3a1   : > { %v1840_v35 = vadd.f32 %v1838_v34, %v3548_v0  ;;  %v1815_v46 = vadd.f32 %v1813_v42, %v3552_v21 }
 0x3a3   : > { %v2751_v36 = vmul.f32 -1.442695, %v1840_v35 }
 0x3a4   : > { %v2919_v37 = vpop.eup %2918 }
 0x3a5   : > { %v2921_v38 = vpop.eup %2920  ;;  %v1733_v39 = vadd.f32 1.0, %v2919_v37  ;;  %2922 = vpow2.f32 %v2751_v36 }
 0x3a6   : > { %v1776_v40 = vadd.f32 1.0, %v2921_v38 }
 0x3a7   : > { %2924 = vrcp.f32 %v1733_v39  ;;  %v1745_v60 = vand.u32 2147483648, %v1733_v39  ;;  %v1743_v1 = vand.u32 2147483647, %v1733_v39  ;;  %vm1739_vm3 = vweird.f32 %v1733_v39 }
 0x3a8   : > { %2926 = vrcp.f32 %v1776_v40  ;;  %v1788_v61 = vand.u32 2147483648, %v1776_v40  ;;  %v1786_v2 = vand.u32 2147483647, %v1776_v40  ;;  %vm1782_vm4 = vweird.f32 %v1776_v40 }
 0x3a9   : > { %v1746_v6 = vor.u32 1.1754944e-38, %v1745_v60  ;;  %vm1744_vm8 = vcmp.eq.f32.partialorder %v1743_v1, 8.507059e+37 }
 0x3aa   : > { %v1789_v10 = vor.u32 1.1754944e-38, %v1788_v61  ;;  %vm1787_vm9 = vcmp.eq.f32.partialorder %v1786_v2, 8.507059e+37 }
 0x3ab   : > { %v2923_v43 = vpop.eup %2922 }
 0x3ac   : > { %v1844_v44 = vadd.f32 1.0, %v2923_v43 }
 0x3ad   : > { %v2925_v45 = vpop.eup %2924 }
 0x3ae   : > { %v2927_v55 = vpop.eup %2926  ;;  %v1735_v56 = vmul.f32 %v2925_v45, %v1733_v39  ;;  %2928 = vrcp.f32 %v1844_v44  ;;  %vm1740_vm1 = vweird.f32 %v2925_v45  ;;  %v1856_v12 = vand.u32 2147483648, %v1844_v44 }
 0x3af   : > { %v1778_v57 = vmul.f32 %v2927_v55, %v1776_v40  ;;  %2930 = vtanh.f32 %v1815_v46  ;;  %vm1783_vm2 = vweird.f32 %v2927_v55  ;;  %vm1741_vm6 = vmor %vm1739_vm3, %vm1740_vm1  ;;  %vm1850_vm11 = vweird.f32 %v1844_v44 }
 0x3b0   : > { %v1736_v58 = vsub.f32 1.0, %v1735_v56  ;;  %vm1784_vm7 = vmor %vm1782_vm4, %vm1783_vm2  ;;  %v1854_v27 = vand.u32 2147483647, %v1844_v44  ;;  %v1857_v29 = vor.u32 1.1754944e-38, %v1856_v12 }
 0x3b1   : > { %v1779_v59 = vsub.f32 1.0, %v1778_v57 }
 0x3b2   : > { %v1737_v62 = vmul.f32 %v2925_v45, %v1736_v58  ;;  %vm1855_vm13 = vcmp.eq.f32.partialorder %v1854_v27, 8.507059e+37 }
 0x3b3   : > { %v1780_v63 = vmul.f32 %v2927_v55, %v1779_v59 }
 0x3b4   : > { %v2929_v3 = vpop.eup %2928  ;;  %v1738_v4 = vadd.f32 %v2925_v45, %v1737_v62 }
 0x3b5   : > { %v1781_v7 = vadd.f32 %v2927_v55, %v1780_v63  ;;  %v1846_v8 = vmul.f32 %v2929_v3, %v1844_v44  ;;  %v2931_v16 = vpop.eup %2930  ;;  %vm1851_vm10 = vweird.f32 %v2929_v3 }
 0x3b6   : > { %v1742_v11 = vsel %vm1741_vm6, %v2925_v45, %v1738_v4  ;;  %vm1852_vm12 = vmor %vm1850_vm11, %vm1851_vm10 }
 0x3b7   : > { %v1747_v5 = vsel %vm1744_vm8, %v1746_v6, %v1742_v11  ;;  %v1785_v17 = vsel %vm1784_vm7, %v2927_v55, %v1781_v7  ;;  %v1847_v18 = vsub.f32 1.0, %v1846_v8 }
 0x3b8   : > { %v1790_v19 = vsel %vm1787_vm9, %v1789_v10, %v1785_v17  ;;  %v1864_v20 = vmul.f32 %v2931_v16, %v1747_v5 }
 0x3b9   : > { %v1863_v22 = vmul.f32 %v1861_v9, %v1790_v19  ;;  %v1848_v23 = vmul.f32 %v2929_v3, %v1847_v18 }
 0x3bb   : > { %v3608_v25 = vadd.f32 %v1864_v20, %v1863_v22  ;;  %v1849_v26 = vadd.f32 %v2929_v3, %v1848_v23 }
 0x3bd   : > { %2932 = vtanh.f32 %v3608_v25  ;;  %v1853_v28 = vsel %vm1852_vm12, %v2929_v3, %v1849_v26  ;;  %v2027_v10 = vrot.slane %v3608_v25, 7 }
 0x3be   : > { %v1858_v31 = vsel %vm1855_vm13, %v1857_v29, %v1853_v28 }
 0x3c3   : > { %v2933_v30 = vpop.eup %2932 }
 0x3c4   : > { %v1867_v32 = vmul.f32 %v2933_v30, %v1858_v31 }
 0x3c6   : > { %v3611_v33 = vrot.slane %v1867_v32, 2 }
 0x3c8   : > { %2752 = vmatmul.msk.f32.vlgmr.msra.gmra.mxu0 %vm1271_vm5, %v3611_v33  ;;  %2754 = vmatmul.msk.f32.vlgmr.msra.gmra.mxu1 %vm1271_vm5, %v3611_v33 }
 0x3c9   : > { %2756 = vmatmul.msk.f32.vlgmr.msra.gmra.mxu2 %vm1271_vm5, %v3611_v33  ;;  %2757 = vmatmul.msk.f32.vlgmr.msrb.gmra.mxu3 %vm1271_vm5, %v3611_v33 }
 0x3ca   : > { %2218 = vmatpush.msra.mxu0 %v3489_v47  ;;  %2261 = vmatpush.msra.mxu1 %v3491_v48 }
 0x3cb   : > { %2304 = vmatpush.msra.mxu2 %v3499_v51  ;;  %2329 = vmatpush.msrb.mxu3 %v3501_v52 }
 0x3cc   : > { %2219 = vmatpush.msra.mxu0 %v3493_v49  ;;  %2262 = vmatpush.msra.mxu1 %v3497_v50 }
 0x3cd   : > { %2305 = vmatpush.msra.mxu2 %v3505_v53  ;;  %2330 = vmatpush.msrb.mxu3 %v3507_v54 }
 0x445   : > { %v1889_v34 = vpop.f32.mrf.mxu0  ;;  %v1932_v35 = vpop.f32.mrf.mxu1 }
 0x446   : > { %v1893_v36 = vrot.slane %v1889_v34, 5  ;;  %v1936_v37 = vrot.slane %v1932_v35, 5 }
 0x448   : > { %v1895_v47 = vadd.f32 %v1893_v36, %v3544_v13  ;;  %v1938_v48 = vadd.f32 %v1936_v37, %v3546_v14 }
 0x44a   : > { %v2753_v38 = vmul.f32 -1.442695, %v1895_v47  ;;  %v2755_v51 = vmul.f32 -1.442695, %v1938_v48 }
 0x44c   : > { %2934 = vpow2.f32 %v2753_v38  ;;  %v2000_v52 = vpop.f32.mrf.mxu3  ;;  %v1975_v42 = vpop.f32.mrf.mxu2 }
 0x44d   : > { %2936 = vpow2.f32 %v2755_v51  ;;  %v2004_v49 = vrot.slane %v2000_v52, 5  ;;  %v1979_v43 = vrot.slane %v1975_v42, 5 }
 0x44f   : > { %v2006_v50 = vadd.f32 %v2004_v49, %v3548_v0  ;;  %v1981_v55 = vadd.f32 %v1979_v43, %v3552_v21 }
 0x451   : > { %v2758_v39 = vmul.f32 -1.442695, %v2006_v50 }
 0x452   : > { %v2935_v53 = vpop.eup %2934 }
 0x453   : > { %v2937_v40 = vpop.eup %2936  ;;  %v1899_v54 = vadd.f32 1.0, %v2935_v53  ;;  %2938 = vpow2.f32 %v2758_v39 }
 0x454   : > { %v1942_v41 = vadd.f32 1.0, %v2937_v40 }
 0x455   : > { %2940 = vrcp.f32 %v1899_v54  ;;  %v1911_v61 = vand.u32 2147483648, %v1899_v54  ;;  %v1909_v63 = vand.u32 2147483647, %v1899_v54  ;;  %vm1905_vm0 = vweird.f32 %v1899_v54 }
 0x456   : > { %2942 = vrcp.f32 %v1942_v41  ;;  %v1954_v62 = vand.u32 2147483648, %v1942_v41  ;;  %v1952_v3 = vand.u32 2147483647, %v1942_v41  ;;  %vm1948_vm1 = vweird.f32 %v1942_v41 }
 0x457   : > { %v1912_v7 = vor.u32 1.1754944e-38, %v1911_v61  ;;  %vm1910_vm4 = vcmp.eq.f32.partialorder %v1909_v63, 8.507059e+37  ;;  %v2412_v61 = vld [vmem:[#allocation14 + $0x20] sm:$0xff] }
 0x458   : > { %v1955_v11 = vor.u32 1.1754944e-38, %v1954_v62  ;;  %vm1953_vm6 = vcmp.eq.f32.partialorder %v1952_v3, 8.507059e+37  ;;  %v2436_v62 = vld [vmem:[#allocation14 + $0x30] sm:$0xff] }
 0x459   : > { %v2939_v44 = vpop.eup %2938 }
 0x45a   : > { %v2010_v45 = vadd.f32 1.0, %v2939_v44 }
 0x45b   : > { %v2941_v46 = vpop.eup %2940 }
 0x45c   : > { %v2943_v56 = vpop.eup %2942  ;;  %v1901_v57 = vmul.f32 %v2941_v46, %v1899_v54  ;;  %2944 = vrcp.f32 %v2010_v45  ;;  %vm1906_vm14 = vweird.f32 %v2941_v46  ;;  %v2022_v25 = vand.u32 2147483648, %v2010_v45 }
 0x45d   : > { %v1944_v58 = vmul.f32 %v2943_v56, %v1942_v41  ;;  %2946 = vtanh.f32 %v1981_v55  ;;  %vm1949_vm15 = vweird.f32 %v2943_v56  ;;  %vm1907_vm2 = vmor %vm1905_vm0, %vm1906_vm14  ;;  %vm2016_vm8 = vweird.f32 %v2010_v45  ;;  %v2367_v55 = vld [vmem:[#allocation14 + $0x8] sm:$0xff] }
 0x45e   : > { %v1902_v59 = vsub.f32 1.0, %v1901_v57  ;;  %vm1950_vm3 = vmor %vm1948_vm1, %vm1949_vm15  ;;  %v2020_v28 = vand.u32 2147483647, %v2010_v45  ;;  %v2023_v30 = vor.u32 1.1754944e-38, %v2022_v25  ;;  %v2437_v57 = vld [vmem:[#allocation14 + $0x38] sm:$0xff] }
 0x45f   : > { %v1945_v60 = vsub.f32 1.0, %v1944_v58  ;;  %v2369_v58 = vld [vmem:[#allocation14 + $0x10] sm:$0xff] }
 0x460   : > { %v1903_v1 = vmul.f32 %v2941_v46, %v1902_v59  ;;  %vm2021_vm10 = vcmp.eq.f32.partialorder %v2020_v28, 8.507059e+37  ;;  %v2366_v59 = vld [vmem:[#allocation14] sm:$0xff] }
 0x461   : > { %v1946_v2 = vmul.f32 %v2943_v56, %v1945_v60 }
 0x462   : > { %v2945_v4 = vpop.eup %2944  ;;  %v1904_v6 = vadd.f32 %v2941_v46, %v1903_v1 }
 0x463   : > { %v1947_v8 = vadd.f32 %v2943_v56, %v1946_v2  ;;  %v2012_v9 = vmul.f32 %v2945_v4, %v2010_v45  ;;  %v2947_v5 = vpop.eup %2946  ;;  %vm2017_vm7 = vweird.f32 %v2945_v4 }
 0x464   : > { %v1908_v16 = vsel %vm1907_vm2, %v2941_v46, %v1904_v6  ;;  %vm2018_vm9 = vmor %vm2016_vm8, %vm2017_vm7  ;;  %v2370_v46 = vld [vmem:[#allocation14 + $0x18] sm:$0xff] }
 0x465   : > { %v1913_v17 = vsel %vm1910_vm4, %v1912_v7, %v1908_v16  ;;  %v1951_v18 = vsel %vm1950_vm3, %v2943_v56, %v1947_v8  ;;  %v2013_v19 = vsub.f32 1.0, %v2012_v9  ;;  %v2413_v56 = vld [vmem:[#allocation14 + $0x28] sm:$0xff] }
 0x466   : > { %v1956_v20 = vsel %vm1953_vm6, %v1955_v11, %v1951_v18  ;;  %v2030_v22 = vmul.f32 %v2947_v5, %v1913_v17 }
 0x467   : > { %v2029_v23 = vmul.f32 %v2027_v10, %v1956_v20  ;;  %v2014_v26 = vmul.f32 %v2945_v4, %v2013_v19 }
 0x469   : > { %v3634_v12 = vadd.f32 %v2030_v22, %v2029_v23  ;;  %v2015_v27 = vadd.f32 %v2945_v4, %v2014_v26 }
 0x46b   : > { %2948 = vtanh.f32 %v3634_v12  ;;  %v2019_v29 = vsel %vm2018_vm9, %v2945_v4, %v2015_v27  ;;  %v2193_v26 = vrot.slane %v3634_v12, 7 }
 0x46c   : > { %v2024_v32 = vsel %vm2021_vm10, %v2023_v30, %v2019_v29 }
 0x471   : > { %v2949_v31 = vpop.eup %2948 }
 0x472   : > { %v2033_v34 = vmul.f32 %v2949_v31, %v2024_v32 }
 0x474   : > { %v3637_v35 = vrot.slane %v2033_v34, 3 }
 0x476   : > { %2759 = vmatmul.msk.f32.vlgmr.msrb.gmra.mxu0 %vm1271_vm5, %v3637_v35  ;;  %2761 = vmatmul.msk.f32.vlgmr.msrb.gmra.mxu1 %vm1271_vm5, %v3637_v35 }
 0x477   : > { %2763 = vmatmul.msk.f32.vlgmr.msrb.gmra.mxu2 %vm1271_vm5, %v3637_v35  ;;  %2764 = vmatmul.msk.f32.vlgmr.msra.gmra.mxu3 %vm1271_vm5, %v3637_v35 }
 0x478   : > { %2385 = vmatpush.msrb.mxu0 %v2370_v46  ;;  %2405 = vmatpush.msrb.mxu1 %v2367_v55 }
 0x479   : > { %2428 = vmatpush.msrb.mxu2 %v2413_v56  ;;  %2452 = vmatpush.msra.mxu3 %v2437_v57  ;;  %v2485_v56 = vld [vmem:[#allocation14 + $0x58] sm:$0xff] }
 0x47a   : > { %2386 = vmatpush.msrb.mxu0 %v2369_v58  ;;  %2406 = vmatpush.msrb.mxu1 %v2366_v59 }
 0x47b   : > { %2429 = vmatpush.msrb.mxu2 %v2412_v61  ;;  %2453 = vmatpush.msra.mxu3 %v2436_v62 }
 0x4f3   : > { %v2055_v36 = vpop.f32.mrf.mxu0  ;;  %v2098_v37 = vpop.f32.mrf.mxu1 }
 0x4f4   : > { %v2059_v47 = vrot.slane %v2055_v36, 4  ;;  %v2102_v48 = vrot.slane %v2098_v37, 4 }
 0x4f6   : > { %v2061_v38 = vadd.f32 %v2059_v47, %v3544_v13  ;;  %v2104_v51 = vadd.f32 %v2102_v48, %v3546_v14 }
 0x4f8   : > { %v2760_v52 = vmul.f32 -1.442695, %v2061_v38  ;;  %v2762_v49 = vmul.f32 -1.442695, %v2104_v51 }
 0x4fa   : > { %2950 = vpow2.f32 %v2760_v52  ;;  %v2166_v50 = vpop.f32.mrf.mxu3  ;;  %v2141_v44 = vpop.f32.mrf.mxu2 }
 0x4fb   : > { %2952 = vpow2.f32 %v2762_v49  ;;  %v2170_v39 = vrot.slane %v2166_v50, 4  ;;  %v2145_v45 = vrot.slane %v2141_v44, 4 }
 0x4fd   : > { %v2172_v53 = vadd.f32 %v2170_v39, %v3548_v0  ;;  %v2147_v2 = vadd.f32 %v2145_v45, %v3552_v21 }
 0x4ff   : > { %v2765_v40 = vmul.f32 -1.442695, %v2172_v53 }
 0x500   : > { %v2951_v54 = vpop.eup %2950 }
 0x501   : > { %v2953_v41 = vpop.eup %2952  ;;  %v2065_v42 = vadd.f32 1.0, %v2951_v54  ;;  %2954 = vpow2.f32 %v2765_v40  ;;  %v2461_v40 = vld [vmem:[#allocation14 + $0x48] sm:$0xff]  ;;  %v2460_v54 = vld [vmem:[#allocation14 + $0x40] sm:$0xff] }
 0x502   : > { %v2108_v43 = vadd.f32 1.0, %v2953_v41 }
 0x503   : > { %2956 = vrcp.f32 %v2065_v42  ;;  %v2077_v9 = vand.u32 2147483648, %v2065_v42  ;;  %v2075_v16 = vand.u32 2147483647, %v2065_v42  ;;  %vm2071_vm13 = vweird.f32 %v2065_v42 }
 0x504   : > { %2958 = vrcp.f32 %v2108_v43  ;;  %v2120_v10 = vand.u32 2147483648, %v2108_v43  ;;  %v2118_v17 = vand.u32 2147483647, %v2108_v43  ;;  %vm2114_vm14 = vweird.f32 %v2108_v43 }
 0x505   : > { %v2078_v20 = vor.u32 1.1754944e-38, %v2077_v9  ;;  %vm2076_vm1 = vcmp.eq.f32.partialorder %v2075_v16, 8.507059e+37 }
 0x506   : > { %v2121_v27 = vor.u32 1.1754944e-38, %v2120_v10  ;;  %vm2119_vm2 = vcmp.eq.f32.partialorder %v2118_v17, 8.507059e+37 }
 0x507   : > { %v2955_v60 = vpop.eup %2954 }
 0x508   : > { %v2176_v1 = vadd.f32 1.0, %v2955_v60 }
 0x509   : > { %v2957_v63 = vpop.eup %2956 }
 0x50a   : > { %v2959_v3 = vpop.eup %2958  ;;  %v2067_v4 = vmul.f32 %v2957_v63, %v2065_v42  ;;  %2960 = vrcp.f32 %v2176_v1  ;;  %vm2072_vm11 = vweird.f32 %v2957_v63  ;;  %v2188_v12 = vand.u32 2147483648, %v2176_v1 }
 0x50b   : > { %v2110_v6 = vmul.f32 %v2959_v3, %v2108_v43  ;;  %2962 = vtanh.f32 %v2147_v2  ;;  %vm2115_vm12 = vweird.f32 %v2959_v3  ;;  %vm2073_vm15 = vmor %vm2071_vm13, %vm2072_vm11  ;;  %vm2182_vm4 = vweird.f32 %v2176_v1 }
 0x50c   : > { %v2068_v7 = vsub.f32 1.0, %v2067_v4  ;;  %vm2116_vm0 = vmor %vm2114_vm14, %vm2115_vm12  ;;  %v2186_v38 = vand.u32 2147483647, %v2176_v1  ;;  %v2189_v52 = vor.u32 1.1754944e-38, %v2188_v12 }
 0x50d   : > { %v2111_v8 = vsub.f32 1.0, %v2110_v6 }
 0x50e   : > { %v2069_v11 = vmul.f32 %v2957_v63, %v2068_v7  ;;  %vm2187_vm7 = vcmp.eq.f32.partialorder %v2186_v38, 8.507059e+37 }
 0x50f   : > { %v2112_v5 = vmul.f32 %v2959_v3, %v2111_v8 }
 0x510   : > { %v2961_v18 = vpop.eup %2960  ;;  %v2070_v19 = vadd.f32 %v2957_v63, %v2069_v11 }
 0x511   : > { %v2113_v22 = vadd.f32 %v2959_v3, %v2112_v5  ;;  %v2178_v23 = vmul.f32 %v2961_v18, %v2176_v1  ;;  %v2963_v28 = vpop.eup %2962  ;;  %vm2183_vm3 = vweird.f32 %v2961_v18 }
 0x512   : > { %v2074_v25 = vsel %vm2073_vm15, %v2957_v63, %v2070_v19  ;;  %vm2184_vm6 = vmor %vm2182_vm4, %vm2183_vm3  ;;  %vm2547_vm4 = vcmask 57344  }
 0x513   : > { %v2079_v29 = vsel %vm2076_vm1, %v2078_v20, %v2074_v25  ;;  %v2117_v30 = vsel %vm2116_vm0, %v2959_v3, %v2113_v22  ;;  %v2179_v31 = vsub.f32 1.0, %v2178_v23 }
 0x514   : > { %v2122_v32 = vsel %vm2119_vm2, %v2121_v27, %v2117_v30  ;;  %v2196_v34 = vmul.f32 %v2963_v28, %v2079_v29 }
 0x515   : > { %v2195_v36 = vmul.f32 %v2193_v26, %v2122_v32  ;;  %v2180_v37 = vmul.f32 %v2961_v18, %v2179_v31 }
 0x517   : > { %v3652_v47 = vadd.f32 %v2196_v34, %v2195_v36  ;;  %v2181_v48 = vadd.f32 %v2961_v18, %v2180_v37 }
 0x519   : > { %2964 = vtanh.f32 %v3652_v47  ;;  %v2185_v51 = vsel %vm2184_vm6, %v2961_v18, %v2181_v48  ;;  %v2359_v26 = vrot.slane %v3652_v47, 7 }
 0x51a   : > { %v2190_v50 = vsel %vm2187_vm7, %v2189_v52, %v2185_v51 }
 0x51f   : > { %v2965_v49 = vpop.eup %2964 }
 0x520   : > { %v2199_v39 = vmul.f32 %v2965_v49, %v2190_v50 }
 0x522   : > { %v2201_v53 = vrot.slane %v2199_v39, 4 }
 0x524   : > { %2766 = vmatmul.msk.f32.vlgmr.msra.gmra.mxu0 %vm1271_vm5, %v2201_v53  ;;  %2768 = vmatmul.msk.f32.vlgmr.msra.gmra.mxu1 %vm1271_vm5, %v2201_v53 }
 0x525   : > { %2770 = vmatmul.msk.f32.vlgmr.msra.gmra.mxu2 %vm1271_vm5, %v2201_v53  ;;  %2771 = vmatmul.msk.f32.vlgmr.msrb.gmra.mxu3 %vm1271_vm5, %v2201_v53 }
 0x526   : > { %2476 = vmatpush.msra.mxu0 %v2461_v40  ;;  %2504 = vmatpush.msra.mxu1 %v2485_v56  ;;  %v2520_v40 = vld [vmem:[%s3745_s12 + $0x20] sm:$0xff] }
 0x528   : > { %2477 = vmatpush.msra.mxu0 %v2460_v54  ;;  %v2519_v54 = vld [vmem:[%s3745_s12 + $0x18] sm:$0xff] }
 0x52c   : > { %2773 = vmatmul.msk.f32.vlgmr.msrb.gmra.mxu0 %vm1271_vm5, %v3585_v24  ;;  %2774 = vmatmul.msk.f32.vlgmr.msrb.gmra.mxu1 %vm1271_vm5, %v3559_v15  ;;  %v2484_v15 = vld [vmem:[#allocation14 + $0x50] sm:$0xff] }
 0x52d   : > { %2775 = vmatmul.msk.f32.vlgmr.msrb.gmra.mxu2 %vm1271_vm5, %v3611_v33  ;;  %2776 = vmatmul.msk.f32.vlgmr.msra.gmra.mxu3 %vm1271_vm5, %v3637_v35 }
 0x52e   : > { %2505 = vmatpush.msra.mxu1 %v2484_v15 }
 0x534   : > { %2777 = vmatmul.msk.f32.vlgmr.msra.gmra.mxu0 %vm1271_vm5, %v2201_v53 }
 0x5a1   : > { %v2221_v41 = vpop.f32.mrf.mxu0  ;;  %v2264_v42 = vpop.f32.mrf.mxu1 }
 0x5a2   : > { %v2225_v43 = vrot.slane %v2221_v41, 3  ;;  %v2268_v44 = vrot.slane %v2264_v42, 3  ;;  %v2518_v41 = vld [vmem:[%s3745_s12 + $0x10] sm:$0xff]  ;;  %v2517_v42 = vld [vmem:[%s3745_s12 + $0x8] sm:$0xff] }
 0x5a4   : > { %v2227_v45 = vadd.f32 %v2225_v43, %v3544_v13  ;;  %v2270_v46 = vadd.f32 %v2268_v44, %v3546_v14  ;;  %v2521_v14 = vld [vmem:[%s3745_s12 + $0x28] sm:$0xff]  ;;  %v2516_v43 = vld [vmem:[%s3745_s12] sm:$0xff] }
 0x5a5   : > { %2537 = vmatpush.msra.mxu2 %v2521_v14  ;;  %v2522_v14 = vld [vmem:[%s3777_s19] sm:$0x1] }
 0x5a6   : > { %v2767_v24 = vmul.f32 -1.442695, %v2227_v45  ;;  %v2769_v55 = vmul.f32 -1.442695, %v2270_v46 }
 0x5a7   : > { %2538 = vmatpush.msra.mxu2 %v2520_v40 }
 0x5a8   : > { %2966 = vpow2.f32 %v2767_v24  ;;  %v2332_v57 = vpop.f32.mrf.mxu3  ;;  %v2307_v62 = vpop.f32.mrf.mxu2 }
 0x5a9   : > { %2968 = vpow2.f32 %v2769_v55  ;;  %v2336_v33 = vrot.slane %v2332_v57, 3  ;;  %v2311_v1 = vrot.slane %v2307_v62, 3  ;;  %2539 = vmatpush.msra.mxu2 %v2519_v54  ;;  %v2388_v44 = vpop.f32.mrf.mxu0  ;;  %v2408_v45 = vpop.f32.mrf.mxu1 }
 0x5aa   : > { %v2409_v24 = vadd.f32 %v2408_v45, %v2388_v44 }
 0x5ab   : > { %v2338_v35 = vadd.f32 %v2336_v33, %v3548_v0  ;;  %v2313_v0 = vadd.f32 %v2311_v1, %v3552_v21  ;;  %2540 = vmatpush.msra.mxu2 %v2518_v41 }
 0x5ad   : > { %v2772_v58 = vmul.f32 -1.442695, %v2338_v35  ;;  %2541 = vmatpush.msra.mxu2 %v2517_v42 }
 0x5ae   : > { %v2967_v59 = vpop.eup %2966 }
 0x5af   : > { %v2969_v60 = vpop.eup %2968  ;;  %v2231_v61 = vadd.f32 1.0, %v2967_v59  ;;  %2970 = vpow2.f32 %v2772_v58  ;;  %2542 = vmatpush.msra.mxu2 %v2516_v43  ;;  %v2511_v58 = vld [vmem:[%s3743_s10] sm:$0x1] }
 0x5b0   : > { %v2274_v13 = vadd.f32 1.0, %v2969_v60  ;;  %v2431_v46 = vpop.f32.mrf.mxu2  ;;  %v2455_v56 = vpop.f32.mrf.mxu3  ;;  %v2513_v60 = vld [vmem:[%s3744_s11] sm:$0x1] }
 0x5b1   : > { %2972 = vrcp.f32 %v2231_v61  ;;  %v2243_v10 = vand.u32 2147483648, %v2231_v61  ;;  %v2241_v5 = vand.u32 2147483647, %v2231_v61  ;;  %vm2237_vm10 = vweird.f32 %v2231_v61  ;;  %v2479_v57 = vpop.f32.mrf.mxu0 }
 0x5b2   : > { %2974 = vrcp.f32 %v2274_v13  ;;  %v2286_v11 = vand.u32 2147483648, %v2274_v13  ;;  %v2284_v18 = vand.u32 2147483647, %v2274_v13  ;;  %vm2280_vm11 = vweird.f32 %v2274_v13 }
 0x5b3   : > { %v2244_v21 = vor.u32 1.1754944e-38, %v2243_v10  ;;  %vm2242_vm14 = vcmp.eq.f32.partialorder %v2241_v5, 8.507059e+37  ;;  %v2434_v55 = vadd.f32 %v2431_v46, %v2409_v24 }
 0x5b4   : > { %v2287_v27 = vor.u32 1.1754944e-38, %v2286_v11  ;;  %vm2285_vm15 = vcmp.eq.f32.partialorder %v2284_v18, 8.507059e+37 }
 0x5b5   : > { %v2971_v63 = vpop.eup %2970  ;;  %v2458_v15 = vadd.f32 %v2455_v56, %v2434_v55 }
 0x5b6   : > { %v2342_v2 = vadd.f32 1.0, %v2971_v63 }
 0x5b7   : > { %v2973_v3 = vpop.eup %2972  ;;  %v2482_v33 = vadd.f32 %v2479_v57, %v2458_v15 }
 0x5b8   : > { %v2975_v4 = vpop.eup %2974  ;;  %v2233_v6 = vmul.f32 %v2973_v3, %v2231_v61  ;;  %2976 = vrcp.f32 %v2342_v2  ;;  %vm2238_vm8 = vweird.f32 %v2973_v3  ;;  %v2354_v38 = vand.u32 2147483648, %v2342_v2 }
 0x5b9   : > { %v2276_v7 = vmul.f32 %v2975_v4, %v2274_v13  ;;  %2978 = vtanh.f32 %v2313_v0  ;;  %vm2281_vm9 = vweird.f32 %v2975_v4  ;;  %vm2239_vm12 = vmor %vm2237_vm10, %vm2238_vm8  ;;  %vm2348_vm1 = vweird.f32 %v2342_v2 }
 0x5ba   : > { %v2234_v8 = vsub.f32 1.0, %v2233_v6  ;;  %vm2282_vm13 = vmor %vm2280_vm11, %vm2281_vm9  ;;  %v2352_v47 = vand.u32 2147483647, %v2342_v2  ;;  %v2355_v52 = vor.u32 1.1754944e-38, %v2354_v38 }
 0x5bb   : > { %v2277_v9 = vsub.f32 1.0, %v2276_v7 }
 0x5bc   : > { %v2235_v16 = vmul.f32 %v2973_v3, %v2234_v8  ;;  %vm2353_vm3 = vcmp.eq.f32.partialorder %v2352_v47, 8.507059e+37 }
 0x5bd   : > { %v2278_v17 = vmul.f32 %v2975_v4, %v2277_v9 }
 0x5be   : > { %v2977_v19 = vpop.eup %2976  ;;  %v2236_v20 = vadd.f32 %v2973_v3, %v2235_v16 }
 0x5bf   : > { %v2279_v22 = vadd.f32 %v2975_v4, %v2278_v17  ;;  %v2344_v23 = vmul.f32 %v2977_v19, %v2342_v2  ;;  %v2979_v28 = vpop.eup %2978  ;;  %vm2349_vm0 = vweird.f32 %v2977_v19 }
 0x5c0   : > { %v2240_v25 = vsel %vm2239_vm12, %v2973_v3, %v2236_v20  ;;  %vm2350_vm2 = vmor %vm2348_vm1, %vm2349_vm0 }
 0x5c1   : > { %v2245_v29 = vsel %vm2242_vm14, %v2244_v21, %v2240_v25  ;;  %v2283_v30 = vsel %vm2282_vm13, %v2975_v4, %v2279_v22  ;;  %v2345_v31 = vsub.f32 1.0, %v2344_v23 }
 0x5c2   : > { %v2288_v32 = vsel %vm2285_vm15, %v2287_v27, %v2283_v30  ;;  %v2362_v34 = vmul.f32 %v2979_v28, %v2245_v29 }
 0x5c3   : > { %v2361_v36 = vmul.f32 %v2359_v26, %v2288_v32  ;;  %v2346_v37 = vmul.f32 %v2977_v19, %v2345_v31 }
 0x5c5   : > { %v2363_v48 = vadd.f32 %v2362_v34, %v2361_v36  ;;  %v2347_v12 = vadd.f32 %v2977_v19, %v2346_v37 }
 0x5c7   : > { %2980 = vtanh.f32 %v2363_v48  ;;  %v2351_v51 = vsel %vm2350_vm2, %v2977_v19, %v2347_v12 }
 0x5c8   : > { %v2356_v50 = vsel %vm2353_vm3, %v2355_v52, %v2351_v51 }
 0x5cd   : > { %v2981_v49 = vpop.eup %2980 }
 0x5ce   : > { %v2365_v39 = vmul.f32 %v2981_v49, %v2356_v50 }
 0x5d0   : > { %v2487_v53 = vrot.slane %v2365_v39, 5 }
 0x5d2   : > { %2778 = vmatmul.msk.f32.vlgmr.msra.gmra.mxu1 %vm1271_vm5, %v2487_v53  ;;  %vm2523_vm5 = vcmask 392192  }
 0x64f   : > { %v2507_v35 = vpop.f32.mrf.mxu1 }
 0x650   : > { %v2510_v59 = vadd.f32 %v2507_v35, %v2482_v33 }
 0x652   : > { %v2512_v61 = vmul.f32 %v2511_v58, %v2510_v59 }
 0x654   : > { %v2514_v13 = vadd.f32 %v2513_v60, %v2512_v61 }
 0x656   : > { %v2515_v62 = vmax.f32 %v2514_v13, 0.0 }
 0x658   : > { %2779 = vmatmul.msk.f32.vlgmr.msra.gmra.mxu2 %vm2523_vm5, %v2515_v62 }
 0x6db   : > { %v2544_v1 = vpop.f32.mrf.mxu2 }
 0x6dc   : > { %v2545_v63 = vadd.f32 %v2544_v1, %v2522_v14 }
 0x6de   : > { %2548 = vst.msk [vmem:[%s542_s1] sm:$0x1] %vm2547_vm4, %v2545_v63 }
 0x6df   : > { %3159 = shalt.err (!%p3156_p8)
}
 0x6e0   : > { %2807 = dma.vmem_to_hbm [thread:$0]  (%p3331_p5), %s2561_s8, 16, %s2563_s13, %s2550_s14  }
 0x6e1 PF: > { %s3779_s15 = sld [smem:[#allocation22_spill]] }
 0x6e2   : > { %s3780_s22 = sld [smem:[#allocation20_spill]] }
 0x6e7   : > { %p2839_p9 = scmp.ge.s32.totalorder %s3779_s15, 2 }
 0x6e8   : > { %s2574_s4 = sand.u32 1, %s3780_s22  }
 0x6e9   : > { %p2826_p10 = pnand %p2839_p9, %p3335_p6  ;;  %s2575_s29 = scalar_lea.sflag [#allocation8], %s2574_s4 }
 0x6eb   : > { %p2827_p11 = pneg %p2826_p10 }
 0x6ed   : > { %3189 = dma.done.wait (%p2827_p11), %s2575_s29, 16  }
 0x6ee   : > { %3191 = vsyncadd (%p2827_p11), %s2575_s29, 4294967280  ;;  %s3782_s16 = sld [smem:[#allocation23_spill]]  ;;  %s3785_s29 = smov %s3198_s30 }
 0x6ef   : > { %s3783_s24 = sld [smem:[#allocation21_spill]] }
 0x6f0   : > { %s3784_s15 = sld [smem:[#allocation24_spill]] }
 0x6f4   : > { %p27_p12 = scmp.ge.s32.totalorder %s3782_s16, 4  }
 0x6f5   : > { %s3786_s30 = smov %s3783_s24 }
 0x6f6   :  { %29 = sbr.rel (!%p27_p12) target bundleno = 12 (0xc), region = 161 }
 0x6fb   :  { %2580 = vsyncpa [#allocation7], 1 }
 0x6fc   :  { %2582 = vsyncpa [#allocation7 + $0x1], 1 }
 0x6fd   :  { %2583 = vsyncpa [#allocation10], 1 }
 0x6fe   :  { %2584 = vsyncpa [#allocation13], 1 }
 0x6ff   :  { %2585 = vsyncpa [#allocation8], 1 }
 0x700   :  { %2587 = vsyncpa [#allocation8 + $0x1], 1 }

</bundles_post_ra>
